<compile_context>
chip_gen: v7x
topology: tpu7x:2x2x1
jax: 0.10.0
libtpu: 0.0.40
codegen_flags: <defaults>
</compile_context>

<pallas_src>
import jax
import jax.numpy as jnp
from jax.experimental import pallas as pl
from jax.experimental.pallas import tpu as pltpu

jax.config.update("jax_default_matmul_precision", "highest")


def rnn_kernel(idx_ref, h0_ref, table_ref, whh_ref, out_ref):
    """Single-invocation kernel: whole sequence, all state resident in VMEM.

    idx_ref  : (T,)      int32, SMEM  — token ids
    h0_ref   : (1, Hp)   f32,   VMEM  — initial hidden, padded to 128 lanes
    table_ref: (V, Hp)   f32,   VMEM  — embedding @ W_ih^T + (b_ih+b_hh), padded
    whh_ref  : (Hp, Hp)  f32,   VMEM  — W_hh^T, zero-padded rows/cols
    out_ref  : (T, Hp)   f32,   VMEM  — h_1..h_T
    """
    T = out_ref.shape[0]

    whh = whh_ref[...]          # load recurrent weights once (16 vregs)
    h = h0_ref[...]             # (1, Hp)

    rows = []
    # T is static and small -> fully unrolled; one MXU push + one EUP tanh per
    # step on the serial critical path.  The table-row gathers have no
    # dependence on h, so the scheduler can hoist/overlap them freely.
    for t in range(T):
        gi = table_ref[pl.ds(idx_ref[t], 1), :]            # fused gather: (1, Hp)
        h = jnp.tanh(gi + jnp.dot(h, whh, preferred_element_type=jnp.float32))
        rows.append(h)

    # Single lane-dense (T, Hp) = (8, 128) store: one unmasked vst.
    out_ref[...] = jnp.concatenate(rows, axis=0)


# ------------------------- one-time parameter prep -------------------------

def prepare_rnn_encoder_params(params):
    """Fold embedding/W_ih/biases and pad to lane-dense layout. Run ONCE."""
    V, E = params["embedding"].shape
    H = params["w_hh"].shape[0]
    assert H <= 128, "single-lane-group layout assumes hidden_size <= 128"
    Hp = 128

    bias = params["b_ih"] + params["b_hh"]                              # (H,)
    proj = params["embedding"] @ params["w_ih"].T + bias[None, :]       # (V, H)

    proj_p = jnp.zeros((V, Hp), jnp.float32).at[:, :H].set(proj)
    whh_p = jnp.zeros((Hp, Hp), jnp.float32).at[:H, :H].set(params["w_hh"].T)
    return {"proj_table": proj_p, "whh_p": whh_p}


# ------------------------------- forward -------------------------------

@jax.jit
def rnn_encoder_forward(word_inputs, hidden_state, prep):
    """Equivalent of RNN_Encoder.forward(word_inputs, hidden_state)."""
    proj_table = prep["proj_table"]
    whh_p = prep["whh_p"]
    V, Hp = proj_table.shape
    H = hidden_state.shape[-1]
    T = word_inputs.shape[0]

    # Only per-call tensor prep: pad the (per-call) hidden state to 128 lanes.
    h0_p = jnp.zeros((1, Hp), jnp.float32).at[:, :H].set(
        hidden_state.reshape(1, H).astype(jnp.float32))

    smem = pl.BlockSpec(memory_space=pltpu.MemorySpace.SMEM)
    vmem = pl.BlockSpec(memory_space=pltpu.MemorySpace.VMEM)

    out_p = pl.pallas_call(
        rnn_kernel,
        out_shape=jax.ShapeDtypeStruct((T, Hp), jnp.float32),
        in_specs=[smem, vmem, vmem, vmem],
        out_specs=vmem,
    )(word_inputs.astype(jnp.int32), h0_p, proj_table, whh_p)

    output = out_p[:, :H].reshape(T, 1, H)
    hidden = output[T - 1].reshape(1, 1, H)
    return output, hidden


# ------------------------- parameter construction -------------------------

def init_rnn_encoder_params(key, vocab_size, embedding_size, hidden_size):
    """Init matching nn.Embedding + nn.RNN(embedding_size, hidden_size) shapes."""
    k = 1.0 / jnp.sqrt(jnp.float32(hidden_size))
    keys = jax.random.split(key, 5)

    def u(kk, shape):
        return jax.random.uniform(kk, shape, jnp.float32, -k, k)

    params = {
        "embedding": jax.random.normal(keys[0], (vocab_size, embedding_size),
                                       jnp.float32),
        "w_ih": u(keys[1], (hidden_size, embedding_size)),   # weight_ih_l0
        "w_hh": u(keys[2], (hidden_size, hidden_size)),      # weight_hh_l0
        "b_ih": u(keys[3], (hidden_size,)),                  # bias_ih_l0
        "b_hh": u(keys[4], (hidden_size,)),                  # bias_hh_l0
    }
    return params


# ------------------------- pure-JAX reference -------------------------

def reference_forward(word_inputs, hidden_state, params):
    emb = jnp.take(params["embedding"], word_inputs, axis=0)          # (T, E)
    T = emb.shape[0]
    h = hidden_state.reshape(1, -1)
    outs = []
    for t in range(T):
        h = jnp.tanh(emb[t:t + 1] @ params["w_ih"].T + params["b_ih"]
                     + h @ params["w_hh"].T + params["b_hh"])
        outs.append(h)
    out = jnp.stack(outs, axis=0)                                     # (T, 1, H)
    return out, h.reshape(1, 1, -1)


# ------------------------------- main -------------------------------

if __name__ == "__main__":
    vocab_size = 50
    embedding_size = 32       # params.embedding_size
    hidden_size = 32          # params.hidden_size
    seq_len = 8

    key = jax.random.PRNGKey(0)
    pkey, ikey, hkey = jax.random.split(key, 3)
    params = init_rnn_encoder_params(pkey, vocab_size, embedding_size, hidden_size)
    prep = jax.tree_util.tree_map(jax.block_until_ready,
                                  prepare_rnn_encoder_params(params))

    word_inputs = jax.random.randint(ikey, (seq_len,), 0, vocab_size, jnp.int32)
    # RNN_Encoder.initHidden() is zeros; use a small random hidden to exercise
    # the h0 path as well.
    hidden0 = 0.1 * jax.random.normal(hkey, (1, 1, hidden_size), jnp.float32)

    out, hout = rnn_encoder_forward(word_inputs, hidden0, prep)
    out = jax.block_until_ready(out)
    hout = jax.block_until_ready(hout)

    ref_out, ref_hout = reference_forward(word_inputs, hidden0, params)
    assert out.shape == (seq_len, 1, hidden_size)
    assert hout.shape == (1, 1, hidden_size)
    assert jnp.allclose(out, ref_out, atol=1e-4, rtol=1e-4)
    assert jnp.allclose(hout, ref_hout, atol=1e-4, rtol=1e-4)

    print("KERNEL_OK")
</pallas_src>

<mosaic_0001>
module attributes {stable_mosaic.version = 11 : i64} {
  func.func @rnn_kernel(%arg0: memref<8xi32, #tpu.memory_space<smem>>, %arg1: memref<1x128xf32, #tpu.memory_space<vmem>>, %arg2: memref<50x128xf32, #tpu.memory_space<vmem>>, %arg3: memref<128x128xf32, #tpu.memory_space<vmem>>, %arg4: memref<8x128xf32, #tpu.memory_space<vmem>>) attributes {dimension_semantics = [], scalar_prefetch = 0 : i64, scratch_operands = 0 : i64, tpu.core_type = #tpu.core_type<tc>} {
    %c0 = arith.constant 0 : index
    %c0_0 = arith.constant 0 : index
    %0 = vector.load %arg3[%c0, %c0_0] : memref<128x128xf32, #tpu.memory_space<vmem>>, vector<128x128xf32>
    %c0_1 = arith.constant 0 : index
    %c0_2 = arith.constant 0 : index
    %1 = vector.load %arg1[%c0_1, %c0_2] : memref<1x128xf32, #tpu.memory_space<vmem>>, vector<1x128xf32>
    %c0_3 = arith.constant 0 : index
    %2 = memref.load %arg0[%c0_3] : memref<8xi32, #tpu.memory_space<smem>>
    %3 = arith.index_cast %2 : i32 to index
    %c0_4 = arith.constant 0 : index
    %4 = vector.load %arg2[%3, %c0_4] : memref<50x128xf32, #tpu.memory_space<vmem>>, vector<1x128xf32>
    %cst = arith.constant dense<0.000000e+00> : vector<1x128xf32>
    %5 = tpu.matmul %1, %0, %cst {dimension_numbers = #tpu.dot_dimension_numbers<[1], [0], [0], [1], [0, 0, 1, 1], [], []>, precision = #tpu.contract_precision<fp32>} : vector<1x128xf32>, vector<128x128xf32>, vector<1x128xf32> -> vector<1x128xf32>
    %6 = arith.addf %4, %5 : vector<1x128xf32>
    %7 = math.tanh %6 : vector<1x128xf32>
    %c1 = arith.constant 1 : index
    %8 = memref.load %arg0[%c1] : memref<8xi32, #tpu.memory_space<smem>>
    %9 = arith.index_cast %8 : i32 to index
    %c0_5 = arith.constant 0 : index
    %10 = vector.load %arg2[%9, %c0_5] : memref<50x128xf32, #tpu.memory_space<vmem>>, vector<1x128xf32>
    %cst_6 = arith.constant dense<0.000000e+00> : vector<1x128xf32>
    %11 = tpu.matmul %7, %0, %cst_6 {dimension_numbers = #tpu.dot_dimension_numbers<[1], [0], [0], [1], [0, 0, 1, 1], [], []>, precision = #tpu.contract_precision<fp32>} : vector<1x128xf32>, vector<128x128xf32>, vector<1x128xf32> -> vector<1x128xf32>
    %12 = arith.addf %10, %11 : vector<1x128xf32>
    %13 = math.tanh %12 : vector<1x128xf32>
    %c2 = arith.constant 2 : index
    %14 = memref.load %arg0[%c2] : memref<8xi32, #tpu.memory_space<smem>>
    %15 = arith.index_cast %14 : i32 to index
    %c0_7 = arith.constant 0 : index
    %16 = vector.load %arg2[%15, %c0_7] : memref<50x128xf32, #tpu.memory_space<vmem>>, vector<1x128xf32>
    %cst_8 = arith.constant dense<0.000000e+00> : vector<1x128xf32>
    %17 = tpu.matmul %13, %0, %cst_8 {dimension_numbers = #tpu.dot_dimension_numbers<[1], [0], [0], [1], [0, 0, 1, 1], [], []>, precision = #tpu.contract_precision<fp32>} : vector<1x128xf32>, vector<128x128xf32>, vector<1x128xf32> -> vector<1x128xf32>
    %18 = arith.addf %16, %17 : vector<1x128xf32>
    %19 = math.tanh %18 : vector<1x128xf32>
    %c3 = arith.constant 3 : index
    %20 = memref.load %arg0[%c3] : memref<8xi32, #tpu.memory_space<smem>>
    %21 = arith.index_cast %20 : i32 to index
    %c0_9 = arith.constant 0 : index
    %22 = vector.load %arg2[%21, %c0_9] : memref<50x128xf32, #tpu.memory_space<vmem>>, vector<1x128xf32>
    %cst_10 = arith.constant dense<0.000000e+00> : vector<1x128xf32>
    %23 = tpu.matmul %19, %0, %cst_10 {dimension_numbers = #tpu.dot_dimension_numbers<[1], [0], [0], [1], [0, 0, 1, 1], [], []>, precision = #tpu.contract_precision<fp32>} : vector<1x128xf32>, vector<128x128xf32>, vector<1x128xf32> -> vector<1x128xf32>
    %24 = arith.addf %22, %23 : vector<1x128xf32>
    %25 = math.tanh %24 : vector<1x128xf32>
    %c4 = arith.constant 4 : index
    %26 = memref.load %arg0[%c4] : memref<8xi32, #tpu.memory_space<smem>>
    %27 = arith.index_cast %26 : i32 to index
    %c0_11 = arith.constant 0 : index
    %28 = vector.load %arg2[%27, %c0_11] : memref<50x128xf32, #tpu.memory_space<vmem>>, vector<1x128xf32>
    %cst_12 = arith.constant dense<0.000000e+00> : vector<1x128xf32>
    %29 = tpu.matmul %25, %0, %cst_12 {dimension_numbers = #tpu.dot_dimension_numbers<[1], [0], [0], [1], [0, 0, 1, 1], [], []>, precision = #tpu.contract_precision<fp32>} : vector<1x128xf32>, vector<128x128xf32>, vector<1x128xf32> -> vector<1x128xf32>
    %30 = arith.addf %28, %29 : vector<1x128xf32>
    %31 = math.tanh %30 : vector<1x128xf32>
    %c5 = arith.constant 5 : index
    %32 = memref.load %arg0[%c5] : memref<8xi32, #tpu.memory_space<smem>>
    %33 = arith.index_cast %32 : i32 to index
    %c0_13 = arith.constant 0 : index
    %34 = vector.load %arg2[%33, %c0_13] : memref<50x128xf32, #tpu.memory_space<vmem>>, vector<1x128xf32>
    %cst_14 = arith.constant dense<0.000000e+00> : vector<1x128xf32>
    %35 = tpu.matmul %31, %0, %cst_14 {dimension_numbers = #tpu.dot_dimension_numbers<[1], [0], [0], [1], [0, 0, 1, 1], [], []>, precision = #tpu.contract_precision<fp32>} : vector<1x128xf32>, vector<128x128xf32>, vector<1x128xf32> -> vector<1x128xf32>
    %36 = arith.addf %34, %35 : vector<1x128xf32>
    %37 = math.tanh %36 : vector<1x128xf32>
    %c6 = arith.constant 6 : index
    %38 = memref.load %arg0[%c6] : memref<8xi32, #tpu.memory_space<smem>>
    %39 = arith.index_cast %38 : i32 to index
    %c0_15 = arith.constant 0 : index
    %40 = vector.load %arg2[%39, %c0_15] : memref<50x128xf32, #tpu.memory_space<vmem>>, vector<1x128xf32>
    %cst_16 = arith.constant dense<0.000000e+00> : vector<1x128xf32>
    %41 = tpu.matmul %37, %0, %cst_16 {dimension_numbers = #tpu.dot_dimension_numbers<[1], [0], [0], [1], [0, 0, 1, 1], [], []>, precision = #tpu.contract_precision<fp32>} : vector<1x128xf32>, vector<128x128xf32>, vector<1x128xf32> -> vector<1x128xf32>
    %42 = arith.addf %40, %41 : vector<1x128xf32>
    %43 = math.tanh %42 : vector<1x128xf32>
    %c7 = arith.constant 7 : index
    %44 = memref.load %arg0[%c7] : memref<8xi32, #tpu.memory_space<smem>>
    %45 = arith.index_cast %44 : i32 to index
    %c0_17 = arith.constant 0 : index
    %46 = vector.load %arg2[%45, %c0_17] : memref<50x128xf32, #tpu.memory_space<vmem>>, vector<1x128xf32>
    %cst_18 = arith.constant dense<0.000000e+00> : vector<1x128xf32>
    %47 = tpu.matmul %43, %0, %cst_18 {dimension_numbers = #tpu.dot_dimension_numbers<[1], [0], [0], [1], [0, 0, 1, 1], [], []>, precision = #tpu.contract_precision<fp32>} : vector<1x128xf32>, vector<128x128xf32>, vector<1x128xf32> -> vector<1x128xf32>
    %48 = arith.addf %46, %47 : vector<1x128xf32>
    %49 = math.tanh %48 : vector<1x128xf32>
    %50 = tpu.concatenate %7, %13, %19, %25, %31, %37, %43, %49 in 0 : vector<1x128xf32>, vector<1x128xf32>, vector<1x128xf32>, vector<1x128xf32>, vector<1x128xf32>, vector<1x128xf32>, vector<1x128xf32>, vector<1x128xf32> -> vector<8x128xf32>
    %c0_19 = arith.constant 0 : index
    %c0_20 = arith.constant 0 : index
    %51 = vector.load %arg4[%c0_19, %c0_20] : memref<8x128xf32, #tpu.memory_space<vmem>>, vector<8x128xf32>
    tpu.vector_store %arg4[%c0_19, %c0_20], %50 {strides = array<i32>} : memref<8x128xf32, #tpu.memory_space<vmem>>, vector<8x128xf32>,
    return
  }
}

</mosaic_0001>

<bundles_post_ra>
// kernel: rnn_encoder_forward.1
= control target key start
LH: loop header
LB: loop body
LE: loop exit
PB: predicated region body
PF: predicated region fallthrough
CT: control target
= control target key end

     0   :  { %9 = vsyncpa [#allocation4], 0  ;;  %s10263_s0 = inlined_call_operand.vmem [shape: s32[8], index: 0, kind: input, shape index: {}]   ;;  %s10264_s1 = inlined_call_operand.vmem [shape: f32[1,128], index: 1, kind: input, shape index: {}]   ;;  %s10265_s2 = inlined_call_operand.hbm [shape: f32[50,128], index: 2, kind: input, shape index: {}]   ;;  %s10266_s3 = inlined_call_operand.hbm [shape: f32[128,128], index: 3, kind: input, shape index: {}]   ;;  %s10267_s4 = inlined_call_operand.vmem [shape: f32[8,128], index: 4, kind: output, shape index: {}]  }
   0x1   :  { %10 = vsyncpa [#allocation3], 0  ;;  %s18_s17 = sshll.u32 %s10263_s0, 4  ;;  %s19_s17 = int_to_ptr.vmem [resolvable:$true] %s18_s17 }
   0x2   :  { %11 = vsyncpa [#allocation7], 0  ;;  %s8973_s18 = scalar_lea.vmem %s19_s17, 16  ;;  %p8978_p1 = scmp.lt.s32.totalorder %s19_s17, %s19_s17 }
   0x3   :  { %p8974_p0 = scmp.ne.s32.totalorder %s19_s17, %s8973_s18  ;;  %p8979_p2 = scmp.lt.s32.totalorder %s8973_s18, %s8973_s18 }
   0x5   :  { %p8980_p3 = por %p8979_p2, %p8978_p1 }
   0x7   :  { %p8981_p4 = pnand %p8980_p3, %p8974_p0 }
   0x9   :  { %8984 = shalt.err (!%p8981_p4)
}
   0xa   :  { %s9035_s19 = smov [#allocation2]   ;;  %s9036_s20 = smov [#allocation5]  }
   0xb   :  { %21 = dma.vmem_to_smem %s19_s17, 16, %s9035_s19, [#allocation4]  }
   0xc   :  { %s29_s21 = sshll.u32 %s9036_s20, 4  ;;  %s8985_s24 = scalar_lea.hbm %s10265_s2, 896  ;;  %s30_s21 = int_to_ptr.vmem [resolvable:$true] %s29_s21 }
   0xd   :  { %p8986_p5 = scmp.ne.s32.totalorder %s10265_s2, %s8985_s24  ;;  %p8989_p6 = scmp.lt.u32.totalorder %s8985_s24, %s10265_s2 }
   0xf   :  { %p8991_p7 = pnand %p8989_p6, %p8986_p5 }
  0x11   :  { %8994 = shalt.err (!%p8991_p7)
}
  0x12   :  { %s8995_s28 = scalar_lea.vmem %s30_s21, 896  ;;  %p9000_p9 = scmp.lt.s32.totalorder %s30_s21, %s30_s21 }
  0x13   :  { %p8996_p8 = scmp.ne.s32.totalorder %s30_s21, %s8995_s28  ;;  %p9001_p10 = scmp.lt.s32.totalorder %s8995_s28, %s8995_s28 }
  0x15   :  { %p9002_p11 = por %p9001_p10, %p9000_p9 }
  0x17   :  { %p9003_p12 = pnand %p9002_p11, %p8996_p8 }
  0x19   :  { %9006 = shalt.err (!%p9003_p12)
}
  0x1a   :  { %s9037_s29 = smov 128   ;;  %s9038_s30 = smov 8  }
  0x1b   :  { %35 = dma.hbm_to_vmem [thread:$0]  %s10265_s2, 896, %s30_s21, [#allocation3], %s9037_s29, %s9037_s29, %s9038_s30  }
  0x1c   :  { %s9039_s7 = smov [#allocation6]   ;;  %s9007_s11 = scalar_lea.hbm %s10266_s3, 2048 }
  0x1d   :  { %s41_s8 = sshll.u32 %s9039_s7, 4  ;;  %p9008_p13 = scmp.ne.s32.totalorder %s10266_s3, %s9007_s11  ;;  %s42_s8 = int_to_ptr.vmem [resolvable:$true] %s41_s8 }
  0x1e   :  { %p9011_p0 = scmp.lt.u32.totalorder %s9007_s11, %s10266_s3 }
  0x20   :  { %p9013_p1 = pnand %p9011_p0, %p9008_p13 }
  0x22   :  { %9016 = shalt.err (!%p9013_p1)
}
  0x23   :  { %s9017_s16 = scalar_lea.vmem %s42_s8, 2048  ;;  %p9022_p3 = scmp.lt.s32.totalorder %s42_s8, %s42_s8 }
  0x24   :  { %p9018_p2 = scmp.ne.s32.totalorder %s42_s8, %s9017_s16  ;;  %p9023_p4 = scmp.lt.s32.totalorder %s9017_s16, %s9017_s16 }
  0x26   :  { %p9024_p5 = por %p9023_p4, %p9022_p3 }
  0x28   :  { %p9025_p6 = pnand %p9024_p5, %p9018_p2 }
  0x2a   :  { %9028 = shalt.err (!%p9025_p6)
}
  0x2b   :  { %47 = dma.hbm_to_vmem [thread:$0]  %s10266_s3, 2048, %s42_s8, [#allocation7], %s9037_s29, %s9037_s29, %s9038_s30  }
  0x2c   :  { %9029 = dma.done.wait [#allocation4], 16  }
  0x2d   :  { %9030 = vsyncadd [#allocation4], 4294967280 }
  0x2e   :  { %9031 = dma.done.wait [#allocation3], 896  }
  0x2f   :  { %9032 = vsyncadd [#allocation3], 4294966400 }
  0x30   :  { %9033 = dma.done.wait [#allocation7], 2048  }
  0x31   :  { %9034 = vsyncadd [#allocation7], 4294965248 }
  0x32   :  { %57 = sfence }
  0x33   :  { %v58_v0 = vld [vmem:[#allocation6] sm:$0xff]  ;;  %v59_v1 = vld [vmem:[#allocation6 + $0x8] sm:$0xff]  ;;  %v60_v2 = vld [vmem:[#allocation6 + $0x10] sm:$0xff]  ;;  %v9040_v3 = vmov 0.0|0.0   ;;  %vm9041_vm0 = vmmov 0   ;;  %v9042_v12 = vmov 0.0  }
  0x34   :  { %7797 = vmatprep.subr.bf16.mxu0 %v9040_v3  ;;  %v79_v4 = vand.u32 4294901760, %v58_v0  ;;  %v82_v5 = vand.u32 4294901760, %v59_v1  ;;  %v61_v6 = vld [vmem:[#allocation6 + $0x18] sm:$0xff]  ;;  %v85_v7 = vand.u32 4294901760, %v60_v2  ;;  %7821 = vmatprep.subr.bf16.mxu1 %v9040_v3  ;;  %v62_v8 = vld [vmem:[#allocation6 + $0x20] sm:$0xff]  ;;  %v63_v9 = vld [vmem:[#allocation6 + $0x28] sm:$0xff] }
  0x35   :  { %v88_v10 = vand.u32 4294901760, %v61_v6  ;;  %v91_v11 = vand.u32 4294901760, %v62_v8  ;;  %6149 = vmatprep.mubr.msk.f32.mxu0 %vm9041_vm0, %v9042_v12  ;;  %6184 = vmatprep.mubr.msk.f32.mxu1 %vm9041_vm0, %v9042_v12  ;;  %v94_v14 = vand.u32 4294901760, %v63_v9  ;;  %v64_v17 = vld [vmem:[#allocation6 + $0x30] sm:$0xff]  ;;  %v65_v18 = vld [vmem:[#allocation6 + $0x38] sm:$0xff]  ;;  %v66_v24 = vld [vmem:[#allocation6 + $0x40] sm:$0xff] }
  0x36   :  { %v9101_v13 = vpack.c.bf16 %v82_v5, %v79_v4  ;;  %v9103_v15 = vsub.f32 %v58_v0, %v79_v4  ;;  %v9105_v16 = vsub.f32 %v59_v1, %v82_v5  ;;  %v9107_v19 = vsub.f32 %v60_v2, %v85_v7  ;;  %v67_v32 = vld [vmem:[#allocation6 + $0x48] sm:$0xff]  ;;  %v9140_v42 = vld [vmem:[#allocation6 + $0x50] sm:$0xff]  ;;  %v69_v46 = vld [vmem:[#allocation6 + $0x58] sm:$0xff]  ;;  %s5294_s20 = sld [smem:[#allocation2 + $0x1]]  ;;  %s5295_s22 = sld [smem:[#allocation2 + $0x2]] }
  0x37   :  { %v9110_v20 = vpack.c.bf16 %v88_v10, %v85_v7  ;;  %v9114_v23 = vsub.f32 %v61_v6, %v88_v10  ;;  %v97_v25 = vand.u32 4294901760, %v64_v17  ;;  %v100_v26 = vand.u32 4294901760, %v65_v18  ;;  %v70_v52 = vld [vmem:[#allocation6 + $0x60] sm:$0xff]  ;;  %v71_v57 = vld [vmem:[#allocation6 + $0x68] sm:$0xff]  ;;  %v9159_v58 = vld [vmem:[#allocation6 + $0x70] sm:$0xff]  ;;  %s5296_s24 = sld [smem:[#allocation2 + $0x3]] }
  0x38   :  { %7799 = vmatpush3.bf16.msra.mxu0 %v9101_v13  ;;  %v172_v21 = vand.u32 4294901760, %v9103_v15  ;;  %v179_v22 = vand.u32 4294901760, %v9105_v16  ;;  %v186_v27 = vand.u32 4294901760, %v9107_v19  ;;  %v9118_v28 = vsub.f32 %v62_v8, %v91_v11  ;;  %v74_v4 = vld [vmem:[%s10264_s1] sm:$0x1]  ;;  %s75_s1 = sld [smem:[#allocation2]] }
  0x39   :  { %7800 = vmatprep.subr.bf16.mxu0 %v9040_v3  ;;  %v193_v31 = vand.u32 4294901760, %v9114_v23  ;;  %v9127_v33 = vsub.f32 %v63_v9, %v94_v14  ;;  %v9129_v34 = vpack.c.bf16 %v94_v14, %v91_v11  ;;  %v103_v36 = vand.u32 4294901760, %v66_v24  ;;  %v73_v14 = vld [vmem:[#allocation6 + $0x78] sm:$0xff]  ;;  %s5297_s0 = sld [smem:[#allocation2 + $0x4]]  ;;  %s5298_s27 = sld [smem:[#allocation2 + $0x5]] }
  0x3a   :  { %v173_v29 = vsub.f32 %v9103_v15, %v172_v21  ;;  %v180_v30 = vsub.f32 %v9105_v16, %v179_v22  ;;  %v187_v35 = vsub.f32 %v9107_v19, %v186_v27  ;;  %v200_v37 = vand.u32 4294901760, %v9118_v28  ;;  %s5299_s29 = sld [smem:[#allocation2 + $0x6]]  ;;  %s5300_s5 = sld [smem:[#allocation2 + $0x7]] }
  0x3b   :  { %v194_v40 = vsub.f32 %v9114_v23, %v193_v31  ;;  %v207_v41 = vand.u32 4294901760, %v9127_v33  ;;  %v106_v44 = vand.u32 4294901760, %v67_v32  ;;  %v9146_v47 = vsub.f32 %v64_v17, %v97_v25 }
  0x3c   :  { %7802 = vmatpush3.bf16.msra.mxu0 %v9110_v20  ;;  %v174_v38 = vand.u32 4294901760, %v173_v29  ;;  %v181_v39 = vand.u32 4294901760, %v180_v30  ;;  %v188_v43 = vand.u32 4294901760, %v187_v35  ;;  %v201_v45 = vsub.f32 %v9118_v28, %v200_v37  ;;  %s722_s21 = scalar_lea.vmem [#allocation5], %s5294_s20  ;;  %s1368_s23 = scalar_lea.vmem [#allocation5], %s5295_s22 }
  0x3d   :  { %7803 = vmatprep.subr.bf16.mxu0 %v9040_v3  ;;  %v195_v49 = vand.u32 4294901760, %v194_v40  ;;  %v208_v50 = vsub.f32 %v9127_v33, %v207_v41  ;;  %v9153_v51 = vsub.f32 %v65_v18, %v100_v26  ;;  %v9155_v53 = vpack.c.bf16 %v100_v26, %v97_v25  ;;  %s2014_s25 = scalar_lea.vmem [#allocation5], %s5296_s24 }
  0x3e   :  { %v9148_v48 = vpack.c.bf16 %v181_v39, %v174_v38  ;;  %v202_v54 = vand.u32 4294901760, %v201_v45  ;;  %v109_v55 = vand.u32 4294901760, %v9140_v42  ;;  %v214_v56 = vand.u32 4294901760, %v9146_v47  ;;  %s76_s19 = scalar_lea.vmem [#allocation5], %s75_s1 }
  0x3f   :  { %v9163_v59 = vpack.c.bf16 %v195_v49, %v188_v43  ;;  %v209_v60 = vand.u32 4294901760, %v208_v50  ;;  %v112_v61 = vand.u32 4294901760, %v69_v46  ;;  %v221_v62 = vand.u32 4294901760, %v9153_v51  ;;  %s2660_s26 = scalar_lea.vmem [#allocation5], %s5297_s0  ;;  %s3306_s28 = scalar_lea.vmem [#allocation5], %s5298_s27 }
  0x40   :  { %7805 = vmatpush3.bf16.msra.mxu0 %v9129_v34  ;;  %7823 = vmatpush3.bf16.msra.mxu1 %v9148_v48  ;;  %v215_v63 = vsub.f32 %v9146_v47, %v214_v56  ;;  %v115_v0 = vand.u32 4294901760, %v70_v52  ;;  %v9171_v1 = vsub.f32 %v66_v24, %v103_v36  ;;  %v9173_v2 = vsub.f32 %v67_v32, %v106_v44  ;;  %s3952_s30 = scalar_lea.vmem [#allocation5], %s5299_s29  ;;  %s4598_s6 = scalar_lea.vmem [#allocation5], %s5300_s5 }
  0x41   :  { %7806 = vmatprep.subr.bf16.mxu0 %v9040_v3  ;;  %7824 = vmatprep.subr.bf16.mxu1 %v9040_v3  ;;  %v9178_v5 = vpack.c.bf16 %v106_v44, %v103_v36  ;;  %v222_v6 = vsub.f32 %v9153_v51, %v221_v62  ;;  %v118_v7 = vand.u32 4294901760, %v71_v57  ;;  %v121_v8 = vand.u32 4294901760, %v9159_v58 }
  0x42   :  { %v9184_v9 = vpack.c.bf16 %v209_v60, %v202_v54  ;;  %v228_v10 = vand.u32 4294901760, %v9171_v1  ;;  %v235_v11 = vand.u32 4294901760, %v9173_v2  ;;  %v9189_v17 = vsub.f32 %v9140_v42, %v109_v55 }
  0x43   :  { %v216_v18 = vand.u32 4294901760, %v215_v63  ;;  %v223_v24 = vand.u32 4294901760, %v222_v6  ;;  %v9193_v25 = vsub.f32 %v69_v46, %v112_v61  ;;  %v9195_v26 = vand.u32 4294901760, %v74_v4 }
  0x44   :  { %7808 = vmatpush3.bf16.msra.mxu0 %v9155_v53  ;;  %7826 = vmatpush3.bf16.msra.mxu1 %v9163_v59  ;;  %v229_v29 = vsub.f32 %v9171_v1, %v228_v10  ;;  %v236_v30 = vsub.f32 %v9173_v2, %v235_v11  ;;  %v242_v32 = vand.u32 4294901760, %v9189_v17  ;;  %v9206_v35 = vsub.f32 %v70_v52, %v115_v0 }
  0x45   :  { %7809 = vmatprep.subr.bf16.mxu0 %v9040_v3  ;;  %7827 = vmatprep.subr.bf16.mxu1 %v9040_v3  ;;  %v124_v36 = vand.u32 4294901760, %v73_v14  ;;  %v249_v38 = vand.u32 4294901760, %v9193_v25  ;;  %v9210_v39 = vsub.f32 %v74_v4, %v9195_v26  ;;  %v9212_v40 = vsub.f32 %v71_v57, %v118_v7 }
  0x46   :  { %v230_v42 = vand.u32 4294901760, %v229_v29  ;;  %v237_v43 = vand.u32 4294901760, %v236_v30  ;;  %v243_v44 = vsub.f32 %v9189_v17, %v242_v32  ;;  %v256_v45 = vand.u32 4294901760, %v9206_v35 }
  0x47   :  { %v9220_v46 = vpack.c.bf16 %v112_v61, %v109_v55  ;;  %v9222_v49 = vpack.c.bf16 %v223_v24, %v216_v18  ;;  %v250_v50 = vsub.f32 %v9193_v25, %v249_v38  ;;  %v263_v52 = vand.u32 4294901760, %v9212_v40 }
  0x48   :  { %7811 = vmatpush3.bf16.msra.mxu0 %v9178_v5  ;;  %7829 = vmatpush3.bf16.msra.mxu1 %v9184_v9  ;;  %v9231_v54 = vsub.f32 %v9159_v58, %v121_v8  ;;  %v9233_v57 = vpack.c.bf16 %v118_v7, %v115_v0  ;;  %v9235_v60 = vsub.f32 %v73_v14, %v124_v36  ;;  %v244_v61 = vand.u32 4294901760, %v243_v44 }
  0x49   :  { %7812 = vmatprep.subr.bf16.mxu0 %v9040_v3  ;;  %7830 = vmatprep.subr.bf16.mxu1 %v9040_v3  ;;  %v9237_v55 = vpack.c.bf16 %v237_v43, %v230_v42  ;;  %v161_v63 = vand.u32 4294901760, %v9210_v39  ;;  %v257_v4 = vsub.f32 %v9206_v35, %v256_v45  ;;  %v251_v6 = vand.u32 4294901760, %v250_v50 }
  0x4a   :  { %v264_v58 = vsub.f32 %v9212_v40, %v263_v52  ;;  %v270_v0 = vand.u32 4294901760, %v9231_v54  ;;  %v277_v7 = vand.u32 4294901760, %v9235_v60  ;;  %v9252_v14 = vpack.c.bf16 %v124_v36, %v121_v8 }
  0x4b   :  { %v162_v18 = vsub.f32 %v9210_v39, %v161_v63  ;;  %v258_v24 = vand.u32 4294901760, %v257_v4  ;;  %v9259_v29 = vpack.c.bf16 %v251_v6, %v244_v61  ;;  %v9275_v44 = vpack.c.bf16 %v9105_v16, %v9103_v15 }
  0x4c   :  { %7814 = vmatpush3.bf16.msra.mxu0 %v9220_v46  ;;  %7832 = vmatpush3.bf16.msra.mxu1 %v9222_v49  ;;  %v265_v30 = vand.u32 4294901760, %v264_v58  ;;  %v271_v42 = vsub.f32 %v9231_v54, %v270_v0  ;;  %v278_v8 = vsub.f32 %v9235_v60, %v277_v7  ;;  %v9285_v6 = vpack.c.bf16 %v9114_v23, %v9107_v19 }
  0x4d   :  { %7815 = vmatprep.subr.bf16.mxu0 %v9040_v3  ;;  %7833 = vmatprep.subr.bf16.mxu1 %v9040_v3  ;;  %v163_v36 = vand.u32 4294901760, %v162_v18  ;;  %v9295_v58 = vpack.c.bf16 %v9127_v33, %v9118_v28  ;;  %v9304_v18 = vpack.c.bf16 %v9153_v51, %v9146_v47  ;;  %v9371_v15 = vpack.c.bf16 %v207_v41, %v200_v37 }
  0x4e   :  { %v9271_v43 = vpack.c.bf16 %v265_v30, %v258_v24  ;;  %v272_v50 = vand.u32 4294901760, %v271_v42  ;;  %v279_v61 = vand.u32 4294901760, %v278_v8  ;;  %v9314_v24 = vpack.c.bf16 %v9173_v2, %v9171_v1 }
  0x4f   :  { %v9322_v30 = vpack.c.bf16 %v9193_v25, %v9189_v17  ;;  %v9330_v42 = vpack.c.bf16 %v9212_v40, %v9206_v35  ;;  %v9338_v8 = vpack.c.bf16 %v9235_v60, %v9231_v54  ;;  %v9383_v16 = vpack.c.bf16 %v221_v62, %v214_v56  ;;  %v77_v17 = vld [vmem:[%s76_s19] sm:$0x1] }
  0x50   :  { %7817 = vmatpush3.bf16.msra.mxu0 %v9233_v57  ;;  %7835 = vmatpush3.bf16.msra.mxu1 %v9237_v55  ;;  %v9281_v4 = vpack.c.bf16 %v279_v61, %v272_v50  ;;  %v9359_v50 = vpack.c.bf16 %v193_v31, %v186_v27  ;;  %v9395_v19 = vpack.c.bf16 %v235_v11, %v228_v10  ;;  %vm5264_vm1 = vcmask 1040384  }
  0x51   :  { %7818 = vmatprep.subr.bf16.mxu0 %v9040_v3  ;;  %7836 = vmatprep.subr.bf16.mxu1 %v9040_v3  ;;  %v9425_v23 = vpack.c.bf16 %v277_v7, %v270_v0  ;;  %vm5266_vm2 = vcmask 1041408   ;;  %vm5268_vm3 = vcmask 1042432   ;;  %vm5270_vm4 = vcmask 1043456  }
  0x52   :  { %vm5272_vm5 = vcmask 1044480   ;;  %vm5274_vm6 = vcmask 1045504   ;;  %vm5276_vm7 = vcmask 1046528  }
  0x54   :  { %7820 = vmatpush3.bf16.msra.mxu0 %v9252_v14  ;;  %7838 = vmatpush3.bf16.msra.mxu1 %v9259_v29 }
  0x55   :  { %7839 = vmatprep.subr.bf16.mxu1 %v9040_v3  ;;  %7845 = vmatprep.subr.bf16.mxu0 %v9040_v3 }
  0x57   :  { %6150 = vmatmul.mubr.f32.vlgmr.msra.gmra.mrb[0].mxu0 %v163_v36  ;;  %v9348_v36 = vpack.c.bf16 %v179_v22, %v172_v21  ;;  %v9405_v21 = vpack.c.bf16 %v249_v38, %v242_v32  ;;  %v9415_v22 = vpack.c.bf16 %v263_v52, %v256_v45 }
  0x58   :  { %7841 = vmatpush3.bf16.msra.mxu1 %v9271_v43  ;;  %7847 = vmatpush3.bf16.msra.mxu0 %v9275_v44 }
  0x59   :  { %7842 = vmatprep.subr.bf16.mxu1 %v9040_v3  ;;  %7848 = vmatprep.subr.bf16.mxu0 %v9040_v3 }
  0x5a   :  { %6219 = vmatprep.mubr.msk.f32.mxu0 %vm9041_vm0, %v9042_v12 }
  0x5c   :  { %7844 = vmatpush3.bf16.msra.mxu1 %v9281_v4  ;;  %7850 = vmatpush3.bf16.msra.mxu0 %v9285_v6 }
  0x5d   :  { %7851 = vmatprep.subr.bf16.mxu0 %v9040_v3  ;;  %7869 = vmatprep.subr.bf16.mxu1 %v9040_v3 }
  0x5f   :  { %6185 = vmatmul.mubr.f32.vlgmr.msra.gmra.mrb[0].mxu1 %v9195_v26 }
  0x60   :  { %7853 = vmatpush3.bf16.msra.mxu0 %v9295_v58  ;;  %7871 = vmatpush3.bf16.msra.mxu1 %v9101_v13 }
  0x61   :  { %7854 = vmatprep.subr.bf16.mxu0 %v9040_v3  ;;  %7872 = vmatprep.subr.bf16.mxu1 %v9040_v3 }
  0x62   :  { %6254 = vmatprep.mubr.msk.f32.mxu1 %vm9041_vm0, %v9042_v12 }
  0x64   :  { %7856 = vmatpush3.bf16.msra.mxu0 %v9304_v18  ;;  %7874 = vmatpush3.bf16.msra.mxu1 %v9110_v20 }
  0x65   :  { %7857 = vmatprep.subr.bf16.mxu0 %v9040_v3  ;;  %7875 = vmatprep.subr.bf16.mxu1 %v9040_v3 }
  0x68   :  { %7859 = vmatpush3.bf16.msra.mxu0 %v9314_v24  ;;  %7877 = vmatpush3.bf16.msra.mxu1 %v9129_v34 }
  0x69   :  { %7860 = vmatprep.subr.bf16.mxu0 %v9040_v3  ;;  %7878 = vmatprep.subr.bf16.mxu1 %v9040_v3 }
  0x6c   :  { %7862 = vmatpush3.bf16.msra.mxu0 %v9322_v30  ;;  %7880 = vmatpush3.bf16.msra.mxu1 %v9155_v53 }
  0x6d   :  { %7863 = vmatprep.subr.bf16.mxu0 %v9040_v3  ;;  %7881 = vmatprep.subr.bf16.mxu1 %v9040_v3 }
  0x70   :  { %7865 = vmatpush3.bf16.msra.mxu0 %v9330_v42  ;;  %7883 = vmatpush3.bf16.msra.mxu1 %v9178_v5 }
  0x71   :  { %7866 = vmatprep.subr.bf16.mxu0 %v9040_v3  ;;  %7884 = vmatprep.subr.bf16.mxu1 %v9040_v3 }
  0x74   :  { %7868 = vmatpush3.bf16.msra.mxu0 %v9338_v8  ;;  %7886 = vmatpush3.bf16.msra.mxu1 %v9220_v46 }
  0x75   :  { %7887 = vmatprep.subr.bf16.mxu1 %v9040_v3  ;;  %7893 = vmatprep.subr.bf16.mxu0 %v9040_v3 }
  0x77   :  { %6220 = vmatmul.mubr.f32.vlgmr.msra.gmra.mrb[2].mxu0 %v9210_v39 }
  0x78   :  { %7889 = vmatpush3.bf16.msra.mxu1 %v9233_v57  ;;  %7895 = vmatpush3.bf16.msra.mxu0 %v9348_v36 }
  0x79   :  { %7890 = vmatprep.subr.bf16.mxu1 %v9040_v3  ;;  %7896 = vmatprep.subr.bf16.mxu0 %v9040_v3 }
  0x7a   :  { %6289 = vmatprep.mubr.msk.f32.mxu0 %vm9041_vm0, %v9042_v12 }
  0x7c   :  { %7892 = vmatpush3.bf16.msra.mxu1 %v9252_v14  ;;  %7898 = vmatpush3.bf16.msra.mxu0 %v9359_v50 }
  0x7d   :  { %7899 = vmatprep.subr.bf16.mxu0 %v9040_v3  ;;  %7917 = vmatprep.subr.bf16.mxu1 %v9040_v3 }
  0x7f   :  { %6255 = vmatmul.mubr.f32.vlgmr.msra.gmra.mrb[2].mxu1 %v161_v63 }
  0x80   :  { %7901 = vmatpush3.bf16.msra.mxu0 %v9371_v15  ;;  %7919 = vmatpush3.bf16.msra.mxu1 %v9101_v13 }
  0x81   :  { %7902 = vmatprep.subr.bf16.mxu0 %v9040_v3  ;;  %7920 = vmatprep.subr.bf16.mxu1 %v9040_v3 }
  0x82   :  { %6324 = vmatprep.mubr.msk.f32.mxu1 %vm9041_vm0, %v9042_v12 }
  0x84   :  { %7904 = vmatpush3.bf16.msra.mxu0 %v9383_v16  ;;  %7922 = vmatpush3.bf16.msra.mxu1 %v9110_v20 }
  0x85   :  { %7905 = vmatprep.subr.bf16.mxu0 %v9040_v3  ;;  %7923 = vmatprep.subr.bf16.mxu1 %v9040_v3 }
  0x88   :  { %7907 = vmatpush3.bf16.msra.mxu0 %v9395_v19  ;;  %7925 = vmatpush3.bf16.msra.mxu1 %v9129_v34 }
  0x89   :  { %7908 = vmatprep.subr.bf16.mxu0 %v9040_v3  ;;  %7926 = vmatprep.subr.bf16.mxu1 %v9040_v3 }
  0x8c   :  { %7910 = vmatpush3.bf16.msra.mxu0 %v9405_v21  ;;  %7928 = vmatpush3.bf16.msra.mxu1 %v9155_v53 }
  0x8d   :  { %7911 = vmatprep.subr.bf16.mxu0 %v9040_v3  ;;  %7929 = vmatprep.subr.bf16.mxu1 %v9040_v3 }
  0x90   :  { %7913 = vmatpush3.bf16.msra.mxu0 %v9415_v22  ;;  %7931 = vmatpush3.bf16.msra.mxu1 %v9178_v5 }
  0x91   :  { %7914 = vmatprep.subr.bf16.mxu0 %v9040_v3  ;;  %7932 = vmatprep.subr.bf16.mxu1 %v9040_v3 }
  0x94   :  { %7916 = vmatpush3.bf16.msra.mxu0 %v9425_v23  ;;  %7934 = vmatpush3.bf16.msra.mxu1 %v9220_v46 }
  0x95   :  { %7935 = vmatprep.subr.bf16.mxu1 %v9040_v3  ;;  %7941 = vmatprep.subr.bf16.mxu0 %v9040_v3 }
  0x97   :  { %6290 = vmatmul.mubr.f32.vlgmr.msra.gmra.mrb[4].mxu0 %v9195_v26 }
  0x98   :  { %7937 = vmatpush3.bf16.msra.mxu1 %v9233_v57  ;;  %7943 = vmatpush3.bf16.msra.mxu0 %v9101_v13 }
  0x99   :  { %7938 = vmatprep.subr.bf16.mxu1 %v9040_v3  ;;  %7944 = vmatprep.subr.bf16.mxu0 %v9040_v3 }
  0x9a   :  { %6359 = vmatprep.mubr.msk.f32.mxu0 %vm9041_vm0, %v9042_v12 }
  0x9c   :  { %7940 = vmatpush3.bf16.msra.mxu1 %v9252_v14  ;;  %7946 = vmatpush3.bf16.msra.mxu0 %v9110_v20 }
  0x9d   :  { %7965 = vmatprep.subr.bf16.mxu1 %v9040_v3  ;;  %7947 = vmatprep.subr.bf16.mxu0 %v9040_v3 }
  0x9f   :  { %6325 = vmatmul.mubr.f32.vlgmr.msra.gmra.mrb[4].mxu1 %v9195_v26 }
  0xa0   :  { %7967 = vmatpush3.bf16.msra.mxu1 %v9148_v48  ;;  %7949 = vmatpush3.bf16.msra.mxu0 %v9129_v34 }
  0xa1   :  { %7968 = vmatprep.subr.bf16.mxu1 %v9040_v3  ;;  %7950 = vmatprep.subr.bf16.mxu0 %v9040_v3 }
  0xa2   :  { %6394 = vmatprep.mubr.msk.f32.mxu1 %vm9041_vm0, %v9042_v12 }
  0xa4   :  { %7970 = vmatpush3.bf16.msra.mxu1 %v9163_v59  ;;  %7952 = vmatpush3.bf16.msra.mxu0 %v9155_v53 }
  0xa5   :  { %7971 = vmatprep.subr.bf16.mxu1 %v9040_v3  ;;  %7953 = vmatprep.subr.bf16.mxu0 %v9040_v3 }
  0xa8   :  { %7973 = vmatpush3.bf16.msra.mxu1 %v9184_v9  ;;  %7955 = vmatpush3.bf16.msra.mxu0 %v9178_v5 }
  0xa9   :  { %7974 = vmatprep.subr.bf16.mxu1 %v9040_v3  ;;  %7956 = vmatprep.subr.bf16.mxu0 %v9040_v3 }
  0xac   :  { %7976 = vmatpush3.bf16.msra.mxu1 %v9222_v49  ;;  %7958 = vmatpush3.bf16.msra.mxu0 %v9220_v46 }
  0xad   :  { %7977 = vmatprep.subr.bf16.mxu1 %v9040_v3  ;;  %7959 = vmatprep.subr.bf16.mxu0 %v9040_v3 }
  0xb0   :  { %7979 = vmatpush3.bf16.msra.mxu1 %v9237_v55  ;;  %7961 = vmatpush3.bf16.msra.mxu0 %v9233_v57 }
  0xb1   :  { %7980 = vmatprep.subr.bf16.mxu1 %v9040_v3  ;;  %7962 = vmatprep.subr.bf16.mxu0 %v9040_v3 }
  0xb4   :  { %7982 = vmatpush3.bf16.msra.mxu1 %v9259_v29  ;;  %7964 = vmatpush3.bf16.msra.mxu0 %v9252_v14 }
  0xb5   :  { %7983 = vmatprep.subr.bf16.mxu1 %v9040_v3  ;;  %7989 = vmatprep.subr.bf16.mxu0 %v9040_v3 }
  0xb8   :  { %7985 = vmatpush3.bf16.msra.mxu1 %v9271_v43 }
  0xb9   :  { %7986 = vmatprep.subr.bf16.mxu1 %v9040_v3 }
  0xbc   :  { %7988 = vmatpush3.bf16.msra.mxu1 %v9281_v4 }
  0xbd   :  { %8013 = vmatprep.subr.bf16.mxu1 %v9040_v3 }
 0x12a   :  { %v165_v27 = vpop.f32.mrb[0].mxu0 }
 0x12b   :  { %v6151_v28 = vpop.f32.mrb[1].mxu0 }
 0x132   :  { %v316_v31 = vpop.f32.mrb[0].mxu1 }
 0x133   :  { %v317_v33 = vadd.f32 %v316_v31, %v165_v27  ;;  %v6186_v37 = vpop.f32.mrb[1].mxu1 }
 0x14a   :  { %v420_v41 = vpop.f32.mrb[2].mxu0 }
 0x14b   :  { %v421_v47 = vadd.f32 %v420_v41, %v317_v33  ;;  %v6221_v51 = vpop.f32.mrb[3].mxu0 }
 0x152   :  { %v509_v56 = vpop.f32.mrb[2].mxu1 }
 0x153   :  { %v510_v62 = vadd.f32 %v509_v56, %v421_v47  ;;  %v6256_v1 = vpop.f32.mrb[3].mxu1 }
 0x16a   :  { %v628_v2 = vpop.f32.mrb[4].mxu0 }
 0x16b   :  { %v629_v10 = vadd.f32 %v628_v2, %v510_v62  ;;  %v6291_v11 = vpop.f32.mrb[5].mxu0  ;;  %v723_v2 = vld [vmem:[%s722_s21] sm:$0x1] }
 0x172   :  { %v715_v25 = vpop.f32.mrb[4].mxu1 }
 0x173   :  { %v716_v26 = vadd.f32 %v715_v25, %v629_v10  ;;  %v6326_v32 = vpop.f32.mrb[5].mxu1 }
 0x175   :  { %v719_v35 = vadd.f32 %v716_v26, %v77_v17 }
 0x177   :  { %8957 = vtanh.f32 %v719_v35 }
 0x181   :  { %v9475_v38 = vpop.eup %8957 }
 0x182   :  { %v9478_v39 = vand.u32 4294901760, %v9475_v38 }
 0x184   :  { %6395 = vmatmul.mubr.f32.vlgmr.msra.gmra.mrb[6].mxu1 %v9478_v39  ;;  %v806_v40 = vsub.f32 %v9475_v38, %v9478_v39 }
 0x185   :  { %8015 = vmatpush3.bf16.msra.mxu1 %v9101_v13  ;;  %6464 = vmatprep.mubr.msk.f32.mxu1 %vm9041_vm0, %v9042_v12 }
 0x186   :  { %8016 = vmatprep.subr.bf16.mxu1 %v9040_v3  ;;  %v807_v45 = vand.u32 4294901760, %v806_v40 }
 0x188   :  { %v808_v52 = vsub.f32 %v806_v40, %v807_v45 }
 0x189   :  { %8018 = vmatpush3.bf16.msra.mxu1 %v9110_v20 }
 0x18a   :  { %8019 = vmatprep.subr.bf16.mxu1 %v9040_v3  ;;  %v809_v54 = vand.u32 4294901760, %v808_v52 }
 0x18c   :  { %6360 = vmatmul.mubr.f32.vlgmr.msra.gmra.mrb[6].mxu0 %v809_v54 }
 0x18d   :  { %7991 = vmatpush3.bf16.msra.mxu0 %v9275_v44  ;;  %8021 = vmatpush3.bf16.msra.mxu1 %v9129_v34 }
 0x18e   :  { %7992 = vmatprep.subr.bf16.mxu0 %v9040_v3  ;;  %8022 = vmatprep.subr.bf16.mxu1 %v9040_v3 }
 0x18f   :  { %6429 = vmatprep.mubr.msk.f32.mxu0 %vm9041_vm0, %v9042_v12 }
 0x191   :  { %7994 = vmatpush3.bf16.msra.mxu0 %v9285_v6  ;;  %8024 = vmatpush3.bf16.msra.mxu1 %v9155_v53 }
 0x192   :  { %7995 = vmatprep.subr.bf16.mxu0 %v9040_v3  ;;  %8025 = vmatprep.subr.bf16.mxu1 %v9040_v3 }
 0x195   :  { %7997 = vmatpush3.bf16.msra.mxu0 %v9295_v58  ;;  %8027 = vmatpush3.bf16.msra.mxu1 %v9178_v5 }
 0x196   :  { %7998 = vmatprep.subr.bf16.mxu0 %v9040_v3  ;;  %8028 = vmatprep.subr.bf16.mxu1 %v9040_v3 }
 0x199   :  { %8000 = vmatpush3.bf16.msra.mxu0 %v9304_v18  ;;  %8030 = vmatpush3.bf16.msra.mxu1 %v9220_v46 }
 0x19a   :  { %8001 = vmatprep.subr.bf16.mxu0 %v9040_v3  ;;  %8031 = vmatprep.subr.bf16.mxu1 %v9040_v3 }
 0x19d   :  { %8003 = vmatpush3.bf16.msra.mxu0 %v9314_v24  ;;  %8033 = vmatpush3.bf16.msra.mxu1 %v9233_v57 }
 0x19e   :  { %8004 = vmatprep.subr.bf16.mxu0 %v9040_v3  ;;  %8034 = vmatprep.subr.bf16.mxu1 %v9040_v3 }
 0x1a1   :  { %8006 = vmatpush3.bf16.msra.mxu0 %v9322_v30  ;;  %8036 = vmatpush3.bf16.msra.mxu1 %v9252_v14 }
 0x1a2   :  { %8007 = vmatprep.subr.bf16.mxu0 %v9040_v3  ;;  %8061 = vmatprep.subr.bf16.mxu1 %v9040_v3 }
 0x1a4   :  { %6465 = vmatmul.mubr.f32.vlgmr.msra.gmra.mrb[8].mxu1 %v807_v45 }
 0x1a5   :  { %8009 = vmatpush3.bf16.msra.mxu0 %v9330_v42  ;;  %8063 = vmatpush3.bf16.msra.mxu1 %v9101_v13 }
 0x1a6   :  { %8010 = vmatprep.subr.bf16.mxu0 %v9040_v3  ;;  %8064 = vmatprep.subr.bf16.mxu1 %v9040_v3 }
 0x1a7   :  { %6534 = vmatprep.mubr.msk.f32.mxu1 %vm9041_vm0, %v9042_v12 }
 0x1a9   :  { %8012 = vmatpush3.bf16.msra.mxu0 %v9338_v8  ;;  %8066 = vmatpush3.bf16.msra.mxu1 %v9110_v20 }
 0x1aa   :  { %8037 = vmatprep.subr.bf16.mxu0 %v9040_v3  ;;  %8067 = vmatprep.subr.bf16.mxu1 %v9040_v3 }
 0x1ac   :  { %6430 = vmatmul.mubr.f32.vlgmr.msra.gmra.mrb[8].mxu0 %v806_v40 }
 0x1ad   :  { %8039 = vmatpush3.bf16.msra.mxu0 %v9348_v36  ;;  %8069 = vmatpush3.bf16.msra.mxu1 %v9129_v34 }
 0x1ae   :  { %8040 = vmatprep.subr.bf16.mxu0 %v9040_v3  ;;  %8070 = vmatprep.subr.bf16.mxu1 %v9040_v3 }
 0x1af   :  { %6499 = vmatprep.mubr.msk.f32.mxu0 %vm9041_vm0, %v9042_v12 }
 0x1b1   :  { %8042 = vmatpush3.bf16.msra.mxu0 %v9359_v50  ;;  %8072 = vmatpush3.bf16.msra.mxu1 %v9155_v53 }
 0x1b2   :  { %8043 = vmatprep.subr.bf16.mxu0 %v9040_v3  ;;  %8073 = vmatprep.subr.bf16.mxu1 %v9040_v3 }
 0x1b5   :  { %8045 = vmatpush3.bf16.msra.mxu0 %v9371_v15  ;;  %8075 = vmatpush3.bf16.msra.mxu1 %v9178_v5 }
 0x1b6   :  { %8046 = vmatprep.subr.bf16.mxu0 %v9040_v3  ;;  %8076 = vmatprep.subr.bf16.mxu1 %v9040_v3 }
 0x1b9   :  { %8048 = vmatpush3.bf16.msra.mxu0 %v9383_v16  ;;  %8078 = vmatpush3.bf16.msra.mxu1 %v9220_v46 }
 0x1ba   :  { %8049 = vmatprep.subr.bf16.mxu0 %v9040_v3  ;;  %8079 = vmatprep.subr.bf16.mxu1 %v9040_v3 }
 0x1bd   :  { %8051 = vmatpush3.bf16.msra.mxu0 %v9395_v19  ;;  %8081 = vmatpush3.bf16.msra.mxu1 %v9233_v57 }
 0x1be   :  { %8052 = vmatprep.subr.bf16.mxu0 %v9040_v3  ;;  %8082 = vmatprep.subr.bf16.mxu1 %v9040_v3 }
 0x1c1   :  { %8054 = vmatpush3.bf16.msra.mxu0 %v9405_v21  ;;  %8084 = vmatpush3.bf16.msra.mxu1 %v9252_v14 }
 0x1c2   :  { %8055 = vmatprep.subr.bf16.mxu0 %v9040_v3  ;;  %8109 = vmatprep.subr.bf16.mxu1 %v9040_v3 }
 0x1c4   :  { %6535 = vmatmul.mubr.f32.vlgmr.msra.gmra.mrb[10].mxu1 %v9478_v39 }
 0x1c5   :  { %8057 = vmatpush3.bf16.msra.mxu0 %v9415_v22  ;;  %8111 = vmatpush3.bf16.msra.mxu1 %v9148_v48 }
 0x1c6   :  { %8058 = vmatprep.subr.bf16.mxu0 %v9040_v3  ;;  %8112 = vmatprep.subr.bf16.mxu1 %v9040_v3 }
 0x1c7   :  { %6604 = vmatprep.mubr.msk.f32.mxu1 %vm9041_vm0, %v9042_v12 }
 0x1c9   :  { %8060 = vmatpush3.bf16.msra.mxu0 %v9425_v23  ;;  %8114 = vmatpush3.bf16.msra.mxu1 %v9163_v59 }
 0x1ca   :  { %8085 = vmatprep.subr.bf16.mxu0 %v9040_v3  ;;  %8115 = vmatprep.subr.bf16.mxu1 %v9040_v3 }
 0x1cc   :  { %6500 = vmatmul.mubr.f32.vlgmr.msra.gmra.mrb[10].mxu0 %v9478_v39 }
 0x1cd   :  { %8087 = vmatpush3.bf16.msra.mxu0 %v9101_v13  ;;  %8117 = vmatpush3.bf16.msra.mxu1 %v9184_v9 }
 0x1ce   :  { %8088 = vmatprep.subr.bf16.mxu0 %v9040_v3  ;;  %8118 = vmatprep.subr.bf16.mxu1 %v9040_v3 }
 0x1cf   :  { %6569 = vmatprep.mubr.msk.f32.mxu0 %vm9041_vm0, %v9042_v12 }
 0x1d1   :  { %8090 = vmatpush3.bf16.msra.mxu0 %v9110_v20  ;;  %8120 = vmatpush3.bf16.msra.mxu1 %v9222_v49 }
 0x1d2   :  { %8091 = vmatprep.subr.bf16.mxu0 %v9040_v3  ;;  %8121 = vmatprep.subr.bf16.mxu1 %v9040_v3 }
 0x1d5   :  { %8093 = vmatpush3.bf16.msra.mxu0 %v9129_v34  ;;  %8123 = vmatpush3.bf16.msra.mxu1 %v9237_v55 }
 0x1d6   :  { %8094 = vmatprep.subr.bf16.mxu0 %v9040_v3  ;;  %8124 = vmatprep.subr.bf16.mxu1 %v9040_v3 }
 0x1d9   :  { %8096 = vmatpush3.bf16.msra.mxu0 %v9155_v53  ;;  %8126 = vmatpush3.bf16.msra.mxu1 %v9259_v29 }
 0x1da   :  { %8097 = vmatprep.subr.bf16.mxu0 %v9040_v3  ;;  %8127 = vmatprep.subr.bf16.mxu1 %v9040_v3 }
 0x1dd   :  { %8099 = vmatpush3.bf16.msra.mxu0 %v9178_v5  ;;  %8129 = vmatpush3.bf16.msra.mxu1 %v9271_v43 }
 0x1de   :  { %8100 = vmatprep.subr.bf16.mxu0 %v9040_v3  ;;  %8130 = vmatprep.subr.bf16.mxu1 %v9040_v3 }
 0x1e1   :  { %8102 = vmatpush3.bf16.msra.mxu0 %v9220_v46  ;;  %8132 = vmatpush3.bf16.msra.mxu1 %v9281_v4 }
 0x1e2   :  { %8103 = vmatprep.subr.bf16.mxu0 %v9040_v3  ;;  %8157 = vmatprep.subr.bf16.mxu1 %v9040_v3 }
 0x1e5   :  { %8105 = vmatpush3.bf16.msra.mxu0 %v9233_v57 }
 0x1e6   :  { %8106 = vmatprep.subr.bf16.mxu0 %v9040_v3 }
 0x1e9   :  { %8108 = vmatpush3.bf16.msra.mxu0 %v9252_v14 }
 0x1ea   :  { %8133 = vmatprep.subr.bf16.mxu0 %v9040_v3 }
 0x257   :  { %v962_v60 = vpop.f32.mrb[6].mxu1 }
 0x258   :  { %v6396_v63 = vpop.f32.mrb[7].mxu1 }
 0x25f   :  { %v811_v0 = vpop.f32.mrb[6].mxu0 }
 0x260   :  { %v963_v7 = vadd.f32 %v962_v60, %v811_v0  ;;  %v6361_v61 = vpop.f32.mrb[7].mxu0 }
 0x277   :  { %v1155_v27 = vpop.f32.mrb[8].mxu1 }
 0x278   :  { %v6466_v28 = vpop.f32.mrb[9].mxu1 }
 0x27f   :  { %v1066_v31 = vpop.f32.mrb[8].mxu0 }
 0x280   :  { %v1067_v33 = vadd.f32 %v1066_v31, %v963_v7  ;;  %v6431_v37 = vpop.f32.mrb[9].mxu0 }
 0x282   :  { %v1156_v41 = vadd.f32 %v1155_v27, %v1067_v33 }
 0x297   :  { %v1361_v47 = vpop.f32.mrb[10].mxu1 }
 0x298   :  { %v6536_v51 = vpop.f32.mrb[11].mxu1 }
 0x299   :  { %v1369_v51 = vld [vmem:[%s1368_s23] sm:$0x1] }
 0x29f   :  { %v1274_v56 = vpop.f32.mrb[10].mxu0 }
 0x2a0   :  { %v1275_v62 = vadd.f32 %v1274_v56, %v1156_v41  ;;  %v6501_v1 = vpop.f32.mrb[11].mxu0 }
 0x2a2   :  { %v1362_v10 = vadd.f32 %v1361_v47, %v1275_v62 }
 0x2a4   :  { %v1365_v11 = vadd.f32 %v1362_v10, %v723_v2 }
 0x2a6   :  { %8959 = vtanh.f32 %v1365_v11 }
 0x2b0   :  { %v9593_v17 = vpop.eup %8959 }
 0x2b1   :  { %v9596_v25 = vand.u32 4294901760, %v9593_v17  ;;  %v5244_v1 = vrot.slane %v9593_v17, 7 }
 0x2b3   :  { %6605 = vmatmul.mubr.f32.vlgmr.msra.gmra.mrb[12].mxu1 %v9596_v25  ;;  %v1452_v26 = vsub.f32 %v9593_v17, %v9596_v25 }
 0x2b4   :  { %8159 = vmatpush3.bf16.msra.mxu1 %v9101_v13  ;;  %6674 = vmatprep.mubr.msk.f32.mxu1 %vm9041_vm0, %v9042_v12 }
 0x2b5   :  { %8160 = vmatprep.subr.bf16.mxu1 %v9040_v3  ;;  %v1453_v32 = vand.u32 4294901760, %v1452_v26 }
 0x2b7   :  { %v1454_v35 = vsub.f32 %v1452_v26, %v1453_v32 }
 0x2b8   :  { %8162 = vmatpush3.bf16.msra.mxu1 %v9110_v20 }
 0x2b9   :  { %8163 = vmatprep.subr.bf16.mxu1 %v9040_v3  ;;  %v1455_v39 = vand.u32 4294901760, %v1454_v35 }
 0x2bb   :  { %6570 = vmatmul.mubr.f32.vlgmr.msra.gmra.mrb[12].mxu0 %v1455_v39 }
 0x2bc   :  { %8135 = vmatpush3.bf16.msra.mxu0 %v9275_v44  ;;  %8165 = vmatpush3.bf16.msra.mxu1 %v9129_v34 }
 0x2bd   :  { %8136 = vmatprep.subr.bf16.mxu0 %v9040_v3  ;;  %8166 = vmatprep.subr.bf16.mxu1 %v9040_v3 }
 0x2be   :  { %6639 = vmatprep.mubr.msk.f32.mxu0 %vm9041_vm0, %v9042_v12 }
 0x2c0   :  { %8138 = vmatpush3.bf16.msra.mxu0 %v9285_v6  ;;  %8168 = vmatpush3.bf16.msra.mxu1 %v9155_v53 }
 0x2c1   :  { %8139 = vmatprep.subr.bf16.mxu0 %v9040_v3  ;;  %8169 = vmatprep.subr.bf16.mxu1 %v9040_v3 }
 0x2c4   :  { %8141 = vmatpush3.bf16.msra.mxu0 %v9295_v58  ;;  %8171 = vmatpush3.bf16.msra.mxu1 %v9178_v5 }
 0x2c5   :  { %8142 = vmatprep.subr.bf16.mxu0 %v9040_v3  ;;  %8172 = vmatprep.subr.bf16.mxu1 %v9040_v3 }
 0x2c8   :  { %8144 = vmatpush3.bf16.msra.mxu0 %v9304_v18  ;;  %8174 = vmatpush3.bf16.msra.mxu1 %v9220_v46 }
 0x2c9   :  { %8145 = vmatprep.subr.bf16.mxu0 %v9040_v3  ;;  %8175 = vmatprep.subr.bf16.mxu1 %v9040_v3 }
 0x2cc   :  { %8147 = vmatpush3.bf16.msra.mxu0 %v9314_v24  ;;  %8177 = vmatpush3.bf16.msra.mxu1 %v9233_v57 }
 0x2cd   :  { %8148 = vmatprep.subr.bf16.mxu0 %v9040_v3  ;;  %8178 = vmatprep.subr.bf16.mxu1 %v9040_v3 }
 0x2d0   :  { %8150 = vmatpush3.bf16.msra.mxu0 %v9322_v30  ;;  %8180 = vmatpush3.bf16.msra.mxu1 %v9252_v14 }
 0x2d1   :  { %8151 = vmatprep.subr.bf16.mxu0 %v9040_v3  ;;  %8205 = vmatprep.subr.bf16.mxu1 %v9040_v3 }
 0x2d3   :  { %6675 = vmatmul.mubr.f32.vlgmr.msra.gmra.mrb[14].mxu1 %v1453_v32 }
 0x2d4   :  { %8153 = vmatpush3.bf16.msra.mxu0 %v9330_v42  ;;  %8207 = vmatpush3.bf16.msra.mxu1 %v9101_v13 }
 0x2d5   :  { %8154 = vmatprep.subr.bf16.mxu0 %v9040_v3  ;;  %8208 = vmatprep.subr.bf16.mxu1 %v9040_v3 }
 0x2d6   :  { %6744 = vmatprep.mubr.msk.f32.mxu1 %vm9041_vm0, %v9042_v12 }
 0x2d8   :  { %8156 = vmatpush3.bf16.msra.mxu0 %v9338_v8  ;;  %8210 = vmatpush3.bf16.msra.mxu1 %v9110_v20 }
 0x2d9   :  { %8181 = vmatprep.subr.bf16.mxu0 %v9040_v3  ;;  %8211 = vmatprep.subr.bf16.mxu1 %v9040_v3 }
 0x2db   :  { %6640 = vmatmul.mubr.f32.vlgmr.msra.gmra.mrb[14].mxu0 %v1452_v26 }
 0x2dc   :  { %8183 = vmatpush3.bf16.msra.mxu0 %v9348_v36  ;;  %8213 = vmatpush3.bf16.msra.mxu1 %v9129_v34 }
 0x2dd   :  { %8184 = vmatprep.subr.bf16.mxu0 %v9040_v3  ;;  %8214 = vmatprep.subr.bf16.mxu1 %v9040_v3 }
 0x2de   :  { %6709 = vmatprep.mubr.msk.f32.mxu0 %vm9041_vm0, %v9042_v12 }
 0x2e0   :  { %8186 = vmatpush3.bf16.msra.mxu0 %v9359_v50  ;;  %8216 = vmatpush3.bf16.msra.mxu1 %v9155_v53 }
 0x2e1   :  { %8187 = vmatprep.subr.bf16.mxu0 %v9040_v3  ;;  %8217 = vmatprep.subr.bf16.mxu1 %v9040_v3 }
 0x2e4   :  { %8189 = vmatpush3.bf16.msra.mxu0 %v9371_v15  ;;  %8219 = vmatpush3.bf16.msra.mxu1 %v9178_v5 }
 0x2e5   :  { %8190 = vmatprep.subr.bf16.mxu0 %v9040_v3  ;;  %8220 = vmatprep.subr.bf16.mxu1 %v9040_v3 }
 0x2e8   :  { %8192 = vmatpush3.bf16.msra.mxu0 %v9383_v16  ;;  %8222 = vmatpush3.bf16.msra.mxu1 %v9220_v46 }
 0x2e9   :  { %8193 = vmatprep.subr.bf16.mxu0 %v9040_v3  ;;  %8223 = vmatprep.subr.bf16.mxu1 %v9040_v3 }
 0x2ec   :  { %8195 = vmatpush3.bf16.msra.mxu0 %v9395_v19  ;;  %8225 = vmatpush3.bf16.msra.mxu1 %v9233_v57 }
 0x2ed   :  { %8196 = vmatprep.subr.bf16.mxu0 %v9040_v3  ;;  %8226 = vmatprep.subr.bf16.mxu1 %v9040_v3 }
 0x2f0   :  { %8198 = vmatpush3.bf16.msra.mxu0 %v9405_v21  ;;  %8228 = vmatpush3.bf16.msra.mxu1 %v9252_v14 }
 0x2f1   :  { %8199 = vmatprep.subr.bf16.mxu0 %v9040_v3  ;;  %8253 = vmatprep.subr.bf16.mxu1 %v9040_v3 }
 0x2f3   :  { %6745 = vmatmul.mubr.f32.vlgmr.msra.gmra.mrb[16].mxu1 %v9596_v25 }
 0x2f4   :  { %8201 = vmatpush3.bf16.msra.mxu0 %v9415_v22  ;;  %8255 = vmatpush3.bf16.msra.mxu1 %v9148_v48 }
 0x2f5   :  { %8202 = vmatprep.subr.bf16.mxu0 %v9040_v3  ;;  %8256 = vmatprep.subr.bf16.mxu1 %v9040_v3 }
 0x2f6   :  { %6814 = vmatprep.mubr.msk.f32.mxu1 %vm9041_vm0, %v9042_v12 }
 0x2f8   :  { %8204 = vmatpush3.bf16.msra.mxu0 %v9425_v23  ;;  %8258 = vmatpush3.bf16.msra.mxu1 %v9163_v59 }
 0x2f9   :  { %8229 = vmatprep.subr.bf16.mxu0 %v9040_v3  ;;  %8259 = vmatprep.subr.bf16.mxu1 %v9040_v3 }
 0x2fb   :  { %6710 = vmatmul.mubr.f32.vlgmr.msra.gmra.mrb[16].mxu0 %v9596_v25  ;;  %v5265_v25 = vsel %vm5264_vm1, %v9475_v38, %v5244_v1 }
 0x2fc   :  { %8231 = vmatpush3.bf16.msra.mxu0 %v9101_v13  ;;  %8261 = vmatpush3.bf16.msra.mxu1 %v9184_v9 }
 0x2fd   :  { %8232 = vmatprep.subr.bf16.mxu0 %v9040_v3  ;;  %8262 = vmatprep.subr.bf16.mxu1 %v9040_v3 }
 0x2fe   :  { %6779 = vmatprep.mubr.msk.f32.mxu0 %vm9041_vm0, %v9042_v12 }
 0x300   :  { %8234 = vmatpush3.bf16.msra.mxu0 %v9110_v20  ;;  %8264 = vmatpush3.bf16.msra.mxu1 %v9222_v49 }
 0x301   :  { %8235 = vmatprep.subr.bf16.mxu0 %v9040_v3  ;;  %8265 = vmatprep.subr.bf16.mxu1 %v9040_v3 }
 0x304   :  { %8237 = vmatpush3.bf16.msra.mxu0 %v9129_v34  ;;  %8267 = vmatpush3.bf16.msra.mxu1 %v9237_v55 }
 0x305   :  { %8238 = vmatprep.subr.bf16.mxu0 %v9040_v3  ;;  %8268 = vmatprep.subr.bf16.mxu1 %v9040_v3 }
 0x308   :  { %8240 = vmatpush3.bf16.msra.mxu0 %v9155_v53  ;;  %8270 = vmatpush3.bf16.msra.mxu1 %v9259_v29 }
 0x309   :  { %8241 = vmatprep.subr.bf16.mxu0 %v9040_v3  ;;  %8271 = vmatprep.subr.bf16.mxu1 %v9040_v3 }
 0x30c   :  { %8243 = vmatpush3.bf16.msra.mxu0 %v9178_v5  ;;  %8273 = vmatpush3.bf16.msra.mxu1 %v9271_v43 }
 0x30d   :  { %8244 = vmatprep.subr.bf16.mxu0 %v9040_v3  ;;  %8274 = vmatprep.subr.bf16.mxu1 %v9040_v3 }
 0x310   :  { %8246 = vmatpush3.bf16.msra.mxu0 %v9220_v46  ;;  %8276 = vmatpush3.bf16.msra.mxu1 %v9281_v4 }
 0x311   :  { %8247 = vmatprep.subr.bf16.mxu0 %v9040_v3  ;;  %8301 = vmatprep.subr.bf16.mxu1 %v9040_v3 }
 0x314   :  { %8249 = vmatpush3.bf16.msra.mxu0 %v9233_v57 }
 0x315   :  { %8250 = vmatprep.subr.bf16.mxu0 %v9040_v3 }
 0x318   :  { %8252 = vmatpush3.bf16.msra.mxu0 %v9252_v14 }
 0x319   :  { %8277 = vmatprep.subr.bf16.mxu0 %v9040_v3 }
 0x386   :  { %v1608_v40 = vpop.f32.mrb[12].mxu1 }
 0x387   :  { %v6606_v45 = vpop.f32.mrb[13].mxu1 }
 0x38e   :  { %v1457_v52 = vpop.f32.mrb[12].mxu0 }
 0x38f   :  { %v1609_v54 = vadd.f32 %v1608_v40, %v1457_v52  ;;  %v6571_v60 = vpop.f32.mrb[13].mxu0 }
 0x3a6   :  { %v1801_v63 = vpop.f32.mrb[14].mxu1 }
 0x3a7   :  { %v6676_v0 = vpop.f32.mrb[15].mxu1 }
 0x3ae   :  { %v1712_v7 = vpop.f32.mrb[14].mxu0 }
 0x3af   :  { %v1713_v61 = vadd.f32 %v1712_v7, %v1609_v54  ;;  %v6641_v27 = vpop.f32.mrb[15].mxu0 }
 0x3b1   :  { %v1802_v28 = vadd.f32 %v1801_v63, %v1713_v61 }
 0x3c6   :  { %v2007_v31 = vpop.f32.mrb[16].mxu1 }
 0x3c7   :  { %v6746_v33 = vpop.f32.mrb[17].mxu1 }
 0x3ce   :  { %v1920_v37 = vpop.f32.mrb[16].mxu0 }
 0x3cf   :  { %v1921_v41 = vadd.f32 %v1920_v37, %v1802_v28  ;;  %v6711_v47 = vpop.f32.mrb[17].mxu0 }
 0x3d0   :  { %v2015_v47 = vld [vmem:[%s2014_s25] sm:$0x1] }
 0x3d1   :  { %v2008_v56 = vadd.f32 %v2007_v31, %v1921_v41 }
 0x3d3   :  { %v2011_v62 = vadd.f32 %v2008_v56, %v1369_v51 }
 0x3d5   :  { %8961 = vtanh.f32 %v2011_v62 }
 0x3df   :  { %v8962_v2 = vpop.eup %8961 }
 0x3e0   :  { %v9712_v10 = vand.u32 4294901760, %v8962_v2  ;;  %v5247_v11 = vrot.slane %v8962_v2, 6 }
 0x3e2   :  { %6815 = vmatmul.mubr.f32.vlgmr.msra.gmra.mrb[18].mxu1 %v9712_v10  ;;  %v2098_v26 = vsub.f32 %v8962_v2, %v9712_v10  ;;  %v9717_v32 = vsel %vm5266_vm2, %v5265_v25, %v5247_v11 }
 0x3e3   :  { %8303 = vmatpush3.bf16.msra.mxu1 %v9101_v13  ;;  %6884 = vmatprep.mubr.msk.f32.mxu1 %vm9041_vm0, %v9042_v12 }
 0x3e4   :  { %8304 = vmatprep.subr.bf16.mxu1 %v9040_v3  ;;  %v2099_v17 = vand.u32 4294901760, %v2098_v26 }
 0x3e6   :  { %v2100_v35 = vsub.f32 %v2098_v26, %v2099_v17 }
 0x3e7   :  { %8306 = vmatpush3.bf16.msra.mxu1 %v9110_v20 }
 0x3e8   :  { %8307 = vmatprep.subr.bf16.mxu1 %v9040_v3  ;;  %v2101_v38 = vand.u32 4294901760, %v2100_v35 }
 0x3ea   :  { %6780 = vmatmul.mubr.f32.vlgmr.msra.gmra.mrb[18].mxu0 %v2101_v38 }
 0x3eb   :  { %8279 = vmatpush3.bf16.msra.mxu0 %v9275_v44  ;;  %8309 = vmatpush3.bf16.msra.mxu1 %v9129_v34 }
 0x3ec   :  { %8280 = vmatprep.subr.bf16.mxu0 %v9040_v3  ;;  %8310 = vmatprep.subr.bf16.mxu1 %v9040_v3 }
 0x3ed   :  { %6849 = vmatprep.mubr.msk.f32.mxu0 %vm9041_vm0, %v9042_v12 }
 0x3ef   :  { %8282 = vmatpush3.bf16.msra.mxu0 %v9285_v6  ;;  %8312 = vmatpush3.bf16.msra.mxu1 %v9155_v53 }
 0x3f0   :  { %8283 = vmatprep.subr.bf16.mxu0 %v9040_v3  ;;  %8313 = vmatprep.subr.bf16.mxu1 %v9040_v3 }
 0x3f3   :  { %8285 = vmatpush3.bf16.msra.mxu0 %v9295_v58  ;;  %8315 = vmatpush3.bf16.msra.mxu1 %v9178_v5 }
 0x3f4   :  { %8286 = vmatprep.subr.bf16.mxu0 %v9040_v3  ;;  %8316 = vmatprep.subr.bf16.mxu1 %v9040_v3 }
 0x3f7   :  { %8288 = vmatpush3.bf16.msra.mxu0 %v9304_v18  ;;  %8318 = vmatpush3.bf16.msra.mxu1 %v9220_v46 }
 0x3f8   :  { %8289 = vmatprep.subr.bf16.mxu0 %v9040_v3  ;;  %8319 = vmatprep.subr.bf16.mxu1 %v9040_v3 }
 0x3fb   :  { %8291 = vmatpush3.bf16.msra.mxu0 %v9314_v24  ;;  %8321 = vmatpush3.bf16.msra.mxu1 %v9233_v57 }
 0x3fc   :  { %8292 = vmatprep.subr.bf16.mxu0 %v9040_v3  ;;  %8322 = vmatprep.subr.bf16.mxu1 %v9040_v3 }
 0x3ff   :  { %8294 = vmatpush3.bf16.msra.mxu0 %v9322_v30  ;;  %8324 = vmatpush3.bf16.msra.mxu1 %v9252_v14 }
 0x400   :  { %8295 = vmatprep.subr.bf16.mxu0 %v9040_v3  ;;  %8349 = vmatprep.subr.bf16.mxu1 %v9040_v3 }
 0x402   :  { %6885 = vmatmul.mubr.f32.vlgmr.msra.gmra.mrb[20].mxu1 %v2099_v17 }
 0x403   :  { %8297 = vmatpush3.bf16.msra.mxu0 %v9330_v42  ;;  %8351 = vmatpush3.bf16.msra.mxu1 %v9101_v13 }
 0x404   :  { %8298 = vmatprep.subr.bf16.mxu0 %v9040_v3  ;;  %8352 = vmatprep.subr.bf16.mxu1 %v9040_v3 }
 0x405   :  { %6954 = vmatprep.mubr.msk.f32.mxu1 %vm9041_vm0, %v9042_v12 }
 0x407   :  { %8300 = vmatpush3.bf16.msra.mxu0 %v9338_v8  ;;  %8354 = vmatpush3.bf16.msra.mxu1 %v9110_v20 }
 0x408   :  { %8325 = vmatprep.subr.bf16.mxu0 %v9040_v3  ;;  %8355 = vmatprep.subr.bf16.mxu1 %v9040_v3 }
 0x40a   :  { %6850 = vmatmul.mubr.f32.vlgmr.msra.gmra.mrb[20].mxu0 %v2098_v26 }
 0x40b   :  { %8327 = vmatpush3.bf16.msra.mxu0 %v9348_v36  ;;  %8357 = vmatpush3.bf16.msra.mxu1 %v9129_v34 }
 0x40c   :  { %8328 = vmatprep.subr.bf16.mxu0 %v9040_v3  ;;  %8358 = vmatprep.subr.bf16.mxu1 %v9040_v3 }
 0x40d   :  { %6919 = vmatprep.mubr.msk.f32.mxu0 %vm9041_vm0, %v9042_v12 }
 0x40f   :  { %8330 = vmatpush3.bf16.msra.mxu0 %v9359_v50  ;;  %8360 = vmatpush3.bf16.msra.mxu1 %v9155_v53 }
 0x410   :  { %8331 = vmatprep.subr.bf16.mxu0 %v9040_v3  ;;  %8361 = vmatprep.subr.bf16.mxu1 %v9040_v3 }
 0x413   :  { %8333 = vmatpush3.bf16.msra.mxu0 %v9371_v15  ;;  %8363 = vmatpush3.bf16.msra.mxu1 %v9178_v5 }
 0x414   :  { %8334 = vmatprep.subr.bf16.mxu0 %v9040_v3  ;;  %8364 = vmatprep.subr.bf16.mxu1 %v9040_v3 }
 0x417   :  { %8336 = vmatpush3.bf16.msra.mxu0 %v9383_v16  ;;  %8366 = vmatpush3.bf16.msra.mxu1 %v9220_v46 }
 0x418   :  { %8337 = vmatprep.subr.bf16.mxu0 %v9040_v3  ;;  %8367 = vmatprep.subr.bf16.mxu1 %v9040_v3 }
 0x41b   :  { %8339 = vmatpush3.bf16.msra.mxu0 %v9395_v19  ;;  %8369 = vmatpush3.bf16.msra.mxu1 %v9233_v57 }
 0x41c   :  { %8340 = vmatprep.subr.bf16.mxu0 %v9040_v3  ;;  %8370 = vmatprep.subr.bf16.mxu1 %v9040_v3 }
 0x41f   :  { %8342 = vmatpush3.bf16.msra.mxu0 %v9405_v21  ;;  %8372 = vmatpush3.bf16.msra.mxu1 %v9252_v14 }
 0x420   :  { %8343 = vmatprep.subr.bf16.mxu0 %v9040_v3  ;;  %8397 = vmatprep.subr.bf16.mxu1 %v9040_v3 }
 0x422   :  { %6955 = vmatmul.mubr.f32.vlgmr.msra.gmra.mrb[22].mxu1 %v9712_v10 }
 0x423   :  { %8345 = vmatpush3.bf16.msra.mxu0 %v9415_v22  ;;  %8399 = vmatpush3.bf16.msra.mxu1 %v9148_v48 }
 0x424   :  { %8346 = vmatprep.subr.bf16.mxu0 %v9040_v3  ;;  %8400 = vmatprep.subr.bf16.mxu1 %v9040_v3 }
 0x425   :  { %7024 = vmatprep.mubr.msk.f32.mxu1 %vm9041_vm0, %v9042_v12 }
 0x427   :  { %8348 = vmatpush3.bf16.msra.mxu0 %v9425_v23  ;;  %8402 = vmatpush3.bf16.msra.mxu1 %v9163_v59 }
 0x428   :  { %8373 = vmatprep.subr.bf16.mxu0 %v9040_v3  ;;  %8403 = vmatprep.subr.bf16.mxu1 %v9040_v3 }
 0x42a   :  { %6920 = vmatmul.mubr.f32.vlgmr.msra.gmra.mrb[22].mxu0 %v9712_v10 }
 0x42b   :  { %8375 = vmatpush3.bf16.msra.mxu0 %v9101_v13  ;;  %8405 = vmatpush3.bf16.msra.mxu1 %v9184_v9 }
 0x42c   :  { %8376 = vmatprep.subr.bf16.mxu0 %v9040_v3  ;;  %8406 = vmatprep.subr.bf16.mxu1 %v9040_v3 }
 0x42d   :  { %6989 = vmatprep.mubr.msk.f32.mxu0 %vm9041_vm0, %v9042_v12 }
 0x42f   :  { %8378 = vmatpush3.bf16.msra.mxu0 %v9110_v20  ;;  %8408 = vmatpush3.bf16.msra.mxu1 %v9222_v49 }
 0x430   :  { %8379 = vmatprep.subr.bf16.mxu0 %v9040_v3  ;;  %8409 = vmatprep.subr.bf16.mxu1 %v9040_v3 }
 0x433   :  { %8381 = vmatpush3.bf16.msra.mxu0 %v9129_v34  ;;  %8411 = vmatpush3.bf16.msra.mxu1 %v9237_v55 }
 0x434   :  { %8382 = vmatprep.subr.bf16.mxu0 %v9040_v3  ;;  %8412 = vmatprep.subr.bf16.mxu1 %v9040_v3 }
 0x437   :  { %8384 = vmatpush3.bf16.msra.mxu0 %v9155_v53  ;;  %8414 = vmatpush3.bf16.msra.mxu1 %v9259_v29 }
 0x438   :  { %8385 = vmatprep.subr.bf16.mxu0 %v9040_v3  ;;  %8415 = vmatprep.subr.bf16.mxu1 %v9040_v3 }
 0x43b   :  { %8387 = vmatpush3.bf16.msra.mxu0 %v9178_v5  ;;  %8417 = vmatpush3.bf16.msra.mxu1 %v9271_v43 }
 0x43c   :  { %8388 = vmatprep.subr.bf16.mxu0 %v9040_v3  ;;  %8418 = vmatprep.subr.bf16.mxu1 %v9040_v3 }
 0x43f   :  { %8390 = vmatpush3.bf16.msra.mxu0 %v9220_v46  ;;  %8420 = vmatpush3.bf16.msra.mxu1 %v9281_v4 }
 0x440   :  { %8391 = vmatprep.subr.bf16.mxu0 %v9040_v3  ;;  %8445 = vmatprep.subr.bf16.mxu1 %v9040_v3 }
 0x443   :  { %8393 = vmatpush3.bf16.msra.mxu0 %v9233_v57 }
 0x444   :  { %8394 = vmatprep.subr.bf16.mxu0 %v9040_v3 }
 0x447   :  { %8396 = vmatpush3.bf16.msra.mxu0 %v9252_v14 }
 0x448   :  { %8421 = vmatprep.subr.bf16.mxu0 %v9040_v3 }
 0x4b5   :  { %v2254_v39 = vpop.f32.mrb[18].mxu1 }
 0x4b6   :  { %v6816_v40 = vpop.f32.mrb[19].mxu1 }
 0x4bd   :  { %v2103_v45 = vpop.f32.mrb[18].mxu0 }
 0x4be   :  { %v2255_v52 = vadd.f32 %v2254_v39, %v2103_v45  ;;  %v6781_v54 = vpop.f32.mrb[19].mxu0 }
 0x4d5   :  { %v2447_v60 = vpop.f32.mrb[20].mxu1 }
 0x4d6   :  { %v6886_v63 = vpop.f32.mrb[21].mxu1 }
 0x4dd   :  { %v2358_v0 = vpop.f32.mrb[20].mxu0 }
 0x4de   :  { %v2359_v7 = vadd.f32 %v2358_v0, %v2255_v52  ;;  %v6851_v61 = vpop.f32.mrb[21].mxu0 }
 0x4e0   :  { %v2448_v27 = vadd.f32 %v2447_v60, %v2359_v7 }
 0x4f5   :  { %v2653_v28 = vpop.f32.mrb[22].mxu1 }
 0x4f6   :  { %v6956_v31 = vpop.f32.mrb[23].mxu1 }
 0x4fd   :  { %v2566_v33 = vpop.f32.mrb[22].mxu0 }
 0x4fe   :  { %v2567_v37 = vadd.f32 %v2566_v33, %v2448_v27  ;;  %v6921_v41 = vpop.f32.mrb[23].mxu0  ;;  %v2661_v33 = vld [vmem:[%s2660_s26] sm:$0x1] }
 0x500   :  { %v2654_v51 = vadd.f32 %v2653_v28, %v2567_v37 }
 0x502   :  { %v2657_v56 = vadd.f32 %v2654_v51, %v2015_v47 }
 0x504   :  { %8963 = vtanh.f32 %v2657_v56 }
 0x50e   :  { %v8964_v62 = vpop.eup %8963 }
 0x50f   :  { %v9829_v1 = vand.u32 4294901760, %v8964_v62  ;;  %v5250_v2 = vrot.slane %v8964_v62, 5 }
 0x511   :  { %7025 = vmatmul.mubr.f32.vlgmr.msra.gmra.mrb[24].mxu1 %v9829_v1  ;;  %v2744_v10 = vsub.f32 %v8964_v62, %v9829_v1  ;;  %v9834_v11 = vsel %vm5268_vm3, %v9717_v32, %v5250_v2 }
 0x512   :  { %8447 = vmatpush3.bf16.msra.mxu1 %v9101_v13  ;;  %7094 = vmatprep.mubr.msk.f32.mxu1 %vm9041_vm0, %v9042_v12 }
 0x513   :  { %8448 = vmatprep.subr.bf16.mxu1 %v9040_v3  ;;  %v2745_v25 = vand.u32 4294901760, %v2744_v10 }
 0x515   :  { %v2746_v26 = vsub.f32 %v2744_v10, %v2745_v25 }
 0x516   :  { %8450 = vmatpush3.bf16.msra.mxu1 %v9110_v20 }
 0x517   :  { %8451 = vmatprep.subr.bf16.mxu1 %v9040_v3  ;;  %v2747_v17 = vand.u32 4294901760, %v2746_v26 }
 0x519   :  { %6990 = vmatmul.mubr.f32.vlgmr.msra.gmra.mrb[24].mxu0 %v2747_v17 }
 0x51a   :  { %8423 = vmatpush3.bf16.msra.mxu0 %v9275_v44  ;;  %8453 = vmatpush3.bf16.msra.mxu1 %v9129_v34 }
 0x51b   :  { %8424 = vmatprep.subr.bf16.mxu0 %v9040_v3  ;;  %8454 = vmatprep.subr.bf16.mxu1 %v9040_v3 }
 0x51c   :  { %7059 = vmatprep.mubr.msk.f32.mxu0 %vm9041_vm0, %v9042_v12 }
 0x51e   :  { %8426 = vmatpush3.bf16.msra.mxu0 %v9285_v6  ;;  %8456 = vmatpush3.bf16.msra.mxu1 %v9155_v53 }
 0x51f   :  { %8427 = vmatprep.subr.bf16.mxu0 %v9040_v3  ;;  %8457 = vmatprep.subr.bf16.mxu1 %v9040_v3 }
 0x522   :  { %8429 = vmatpush3.bf16.msra.mxu0 %v9295_v58  ;;  %8459 = vmatpush3.bf16.msra.mxu1 %v9178_v5 }
 0x523   :  { %8430 = vmatprep.subr.bf16.mxu0 %v9040_v3  ;;  %8460 = vmatprep.subr.bf16.mxu1 %v9040_v3 }
 0x526   :  { %8432 = vmatpush3.bf16.msra.mxu0 %v9304_v18  ;;  %8462 = vmatpush3.bf16.msra.mxu1 %v9220_v46 }
 0x527   :  { %8433 = vmatprep.subr.bf16.mxu0 %v9040_v3  ;;  %8463 = vmatprep.subr.bf16.mxu1 %v9040_v3 }
 0x52a   :  { %8435 = vmatpush3.bf16.msra.mxu0 %v9314_v24  ;;  %8465 = vmatpush3.bf16.msra.mxu1 %v9233_v57 }
 0x52b   :  { %8436 = vmatprep.subr.bf16.mxu0 %v9040_v3  ;;  %8466 = vmatprep.subr.bf16.mxu1 %v9040_v3 }
 0x52e   :  { %8438 = vmatpush3.bf16.msra.mxu0 %v9322_v30  ;;  %8468 = vmatpush3.bf16.msra.mxu1 %v9252_v14 }
 0x52f   :  { %8439 = vmatprep.subr.bf16.mxu0 %v9040_v3  ;;  %8493 = vmatprep.subr.bf16.mxu1 %v9040_v3 }
 0x531   :  { %7095 = vmatmul.mubr.f32.vlgmr.msra.gmra.mrb[26].mxu1 %v2745_v25 }
 0x532   :  { %8441 = vmatpush3.bf16.msra.mxu0 %v9330_v42  ;;  %8495 = vmatpush3.bf16.msra.mxu1 %v9101_v13 }
 0x533   :  { %8442 = vmatprep.subr.bf16.mxu0 %v9040_v3  ;;  %8496 = vmatprep.subr.bf16.mxu1 %v9040_v3 }
 0x534   :  { %7164 = vmatprep.mubr.msk.f32.mxu1 %vm9041_vm0, %v9042_v12 }
 0x536   :  { %8444 = vmatpush3.bf16.msra.mxu0 %v9338_v8  ;;  %8498 = vmatpush3.bf16.msra.mxu1 %v9110_v20 }
 0x537   :  { %8469 = vmatprep.subr.bf16.mxu0 %v9040_v3  ;;  %8499 = vmatprep.subr.bf16.mxu1 %v9040_v3 }
 0x539   :  { %7060 = vmatmul.mubr.f32.vlgmr.msra.gmra.mrb[26].mxu0 %v2744_v10 }
 0x53a   :  { %8471 = vmatpush3.bf16.msra.mxu0 %v9348_v36  ;;  %8501 = vmatpush3.bf16.msra.mxu1 %v9129_v34 }
 0x53b   :  { %8472 = vmatprep.subr.bf16.mxu0 %v9040_v3  ;;  %8502 = vmatprep.subr.bf16.mxu1 %v9040_v3 }
 0x53c   :  { %7129 = vmatprep.mubr.msk.f32.mxu0 %vm9041_vm0, %v9042_v12 }
 0x53e   :  { %8474 = vmatpush3.bf16.msra.mxu0 %v9359_v50  ;;  %8504 = vmatpush3.bf16.msra.mxu1 %v9155_v53 }
 0x53f   :  { %8475 = vmatprep.subr.bf16.mxu0 %v9040_v3  ;;  %8505 = vmatprep.subr.bf16.mxu1 %v9040_v3 }
 0x542   :  { %8477 = vmatpush3.bf16.msra.mxu0 %v9371_v15  ;;  %8507 = vmatpush3.bf16.msra.mxu1 %v9178_v5 }
 0x543   :  { %8478 = vmatprep.subr.bf16.mxu0 %v9040_v3  ;;  %8508 = vmatprep.subr.bf16.mxu1 %v9040_v3 }
 0x546   :  { %8480 = vmatpush3.bf16.msra.mxu0 %v9383_v16  ;;  %8510 = vmatpush3.bf16.msra.mxu1 %v9220_v46 }
 0x547   :  { %8481 = vmatprep.subr.bf16.mxu0 %v9040_v3  ;;  %8511 = vmatprep.subr.bf16.mxu1 %v9040_v3 }
 0x54a   :  { %8483 = vmatpush3.bf16.msra.mxu0 %v9395_v19  ;;  %8513 = vmatpush3.bf16.msra.mxu1 %v9233_v57 }
 0x54b   :  { %8484 = vmatprep.subr.bf16.mxu0 %v9040_v3  ;;  %8514 = vmatprep.subr.bf16.mxu1 %v9040_v3 }
 0x54e   :  { %8486 = vmatpush3.bf16.msra.mxu0 %v9405_v21  ;;  %8516 = vmatpush3.bf16.msra.mxu1 %v9252_v14 }
 0x54f   :  { %8487 = vmatprep.subr.bf16.mxu0 %v9040_v3  ;;  %8541 = vmatprep.subr.bf16.mxu1 %v9040_v3 }
 0x551   :  { %7165 = vmatmul.mubr.f32.vlgmr.msra.gmra.mrb[28].mxu1 %v9829_v1 }
 0x552   :  { %8489 = vmatpush3.bf16.msra.mxu0 %v9415_v22  ;;  %8543 = vmatpush3.bf16.msra.mxu1 %v9148_v48 }
 0x553   :  { %8490 = vmatprep.subr.bf16.mxu0 %v9040_v3  ;;  %8544 = vmatprep.subr.bf16.mxu1 %v9040_v3 }
 0x554   :  { %7234 = vmatprep.mubr.msk.f32.mxu1 %vm9041_vm0, %v9042_v12 }
 0x556   :  { %8492 = vmatpush3.bf16.msra.mxu0 %v9425_v23  ;;  %8546 = vmatpush3.bf16.msra.mxu1 %v9163_v59 }
 0x557   :  { %8517 = vmatprep.subr.bf16.mxu0 %v9040_v3  ;;  %8547 = vmatprep.subr.bf16.mxu1 %v9040_v3 }
 0x559   :  { %7130 = vmatmul.mubr.f32.vlgmr.msra.gmra.mrb[28].mxu0 %v9829_v1 }
 0x55a   :  { %8519 = vmatpush3.bf16.msra.mxu0 %v9101_v13  ;;  %8549 = vmatpush3.bf16.msra.mxu1 %v9184_v9 }
 0x55b   :  { %8520 = vmatprep.subr.bf16.mxu0 %v9040_v3  ;;  %8550 = vmatprep.subr.bf16.mxu1 %v9040_v3 }
 0x55c   :  { %7199 = vmatprep.mubr.msk.f32.mxu0 %vm9041_vm0, %v9042_v12 }
 0x55e   :  { %8522 = vmatpush3.bf16.msra.mxu0 %v9110_v20  ;;  %8552 = vmatpush3.bf16.msra.mxu1 %v9222_v49 }
 0x55f   :  { %8523 = vmatprep.subr.bf16.mxu0 %v9040_v3  ;;  %8553 = vmatprep.subr.bf16.mxu1 %v9040_v3 }
 0x562   :  { %8525 = vmatpush3.bf16.msra.mxu0 %v9129_v34  ;;  %8555 = vmatpush3.bf16.msra.mxu1 %v9237_v55 }
 0x563   :  { %8526 = vmatprep.subr.bf16.mxu0 %v9040_v3  ;;  %8556 = vmatprep.subr.bf16.mxu1 %v9040_v3 }
 0x566   :  { %8528 = vmatpush3.bf16.msra.mxu0 %v9155_v53  ;;  %8558 = vmatpush3.bf16.msra.mxu1 %v9259_v29 }
 0x567   :  { %8529 = vmatprep.subr.bf16.mxu0 %v9040_v3  ;;  %8559 = vmatprep.subr.bf16.mxu1 %v9040_v3 }
 0x56a   :  { %8531 = vmatpush3.bf16.msra.mxu0 %v9178_v5  ;;  %8561 = vmatpush3.bf16.msra.mxu1 %v9271_v43 }
 0x56b   :  { %8532 = vmatprep.subr.bf16.mxu0 %v9040_v3  ;;  %8562 = vmatprep.subr.bf16.mxu1 %v9040_v3 }
 0x56e   :  { %8534 = vmatpush3.bf16.msra.mxu0 %v9220_v46  ;;  %8564 = vmatpush3.bf16.msra.mxu1 %v9281_v4 }
 0x56f   :  { %8535 = vmatprep.subr.bf16.mxu0 %v9040_v3  ;;  %8589 = vmatprep.subr.bf16.mxu1 %v9040_v3 }
 0x572   :  { %8537 = vmatpush3.bf16.msra.mxu0 %v9233_v57 }
 0x573   :  { %8538 = vmatprep.subr.bf16.mxu0 %v9040_v3 }
 0x576   :  { %8540 = vmatpush3.bf16.msra.mxu0 %v9252_v14 }
 0x577   :  { %8565 = vmatprep.subr.bf16.mxu0 %v9040_v3 }
 0x5e4   :  { %v2900_v32 = vpop.f32.mrb[24].mxu1 }
 0x5e5   :  { %v7026_v35 = vpop.f32.mrb[25].mxu1 }
 0x5ec   :  { %v2749_v38 = vpop.f32.mrb[24].mxu0 }
 0x5ed   :  { %v2901_v39 = vadd.f32 %v2900_v32, %v2749_v38  ;;  %v6991_v40 = vpop.f32.mrb[25].mxu0 }
 0x604   :  { %v3093_v45 = vpop.f32.mrb[26].mxu1 }
 0x605   :  { %v7096_v52 = vpop.f32.mrb[27].mxu1 }
 0x60c   :  { %v3004_v54 = vpop.f32.mrb[26].mxu0 }
 0x60d   :  { %v3005_v60 = vadd.f32 %v3004_v54, %v2901_v39  ;;  %v7061_v63 = vpop.f32.mrb[27].mxu0 }
 0x60f   :  { %v3094_v0 = vadd.f32 %v3093_v45, %v3005_v60 }
 0x624   :  { %v3299_v7 = vpop.f32.mrb[28].mxu1 }
 0x625   :  { %v7166_v61 = vpop.f32.mrb[29].mxu1 }
 0x62c   :  { %v3212_v27 = vpop.f32.mrb[28].mxu0 }
 0x62d   :  { %v3213_v28 = vadd.f32 %v3212_v27, %v3094_v0  ;;  %v7131_v31 = vpop.f32.mrb[29].mxu0  ;;  %v3307_v27 = vld [vmem:[%s3306_s28] sm:$0x1] }
 0x62f   :  { %v3300_v37 = vadd.f32 %v3299_v7, %v3213_v28 }
 0x631   :  { %v3303_v41 = vadd.f32 %v3300_v37, %v2661_v33 }
 0x633   :  { %8965 = vtanh.f32 %v3303_v41 }
 0x63d   :  { %v8966_v47 = vpop.eup %8965 }
 0x63e   :  { %v9946_v51 = vand.u32 4294901760, %v8966_v47  ;;  %v5253_v56 = vrot.slane %v8966_v47, 4 }
 0x640   :  { %7235 = vmatmul.mubr.f32.vlgmr.msra.gmra.mrb[30].mxu1 %v9946_v51  ;;  %v3390_v62 = vsub.f32 %v8966_v47, %v9946_v51  ;;  %v9951_v1 = vsel %vm5270_vm4, %v9834_v11, %v5253_v56 }
 0x641   :  { %8591 = vmatpush3.bf16.msra.mxu1 %v9101_v13  ;;  %7304 = vmatprep.mubr.msk.f32.mxu1 %vm9041_vm0, %v9042_v12 }
 0x642   :  { %8592 = vmatprep.subr.bf16.mxu1 %v9040_v3  ;;  %v3391_v2 = vand.u32 4294901760, %v3390_v62 }
 0x644   :  { %v3392_v10 = vsub.f32 %v3390_v62, %v3391_v2 }
 0x645   :  { %8594 = vmatpush3.bf16.msra.mxu1 %v9110_v20 }
 0x646   :  { %8595 = vmatprep.subr.bf16.mxu1 %v9040_v3  ;;  %v3393_v25 = vand.u32 4294901760, %v3392_v10 }
 0x648   :  { %7200 = vmatmul.mubr.f32.vlgmr.msra.gmra.mrb[30].mxu0 %v3393_v25 }
 0x649   :  { %8567 = vmatpush3.bf16.msra.mxu0 %v9275_v44  ;;  %8597 = vmatpush3.bf16.msra.mxu1 %v9129_v34 }
 0x64a   :  { %8568 = vmatprep.subr.bf16.mxu0 %v9040_v3  ;;  %8598 = vmatprep.subr.bf16.mxu1 %v9040_v3 }
 0x64b   :  { %7269 = vmatprep.mubr.msk.f32.mxu0 %vm9041_vm0, %v9042_v12 }
 0x64d   :  { %8570 = vmatpush3.bf16.msra.mxu0 %v9285_v6  ;;  %8600 = vmatpush3.bf16.msra.mxu1 %v9155_v53 }
 0x64e   :  { %8571 = vmatprep.subr.bf16.mxu0 %v9040_v3  ;;  %8601 = vmatprep.subr.bf16.mxu1 %v9040_v3 }
 0x651   :  { %8573 = vmatpush3.bf16.msra.mxu0 %v9295_v58  ;;  %8603 = vmatpush3.bf16.msra.mxu1 %v9178_v5 }
 0x652   :  { %8574 = vmatprep.subr.bf16.mxu0 %v9040_v3  ;;  %8604 = vmatprep.subr.bf16.mxu1 %v9040_v3 }
 0x655   :  { %8576 = vmatpush3.bf16.msra.mxu0 %v9304_v18  ;;  %8606 = vmatpush3.bf16.msra.mxu1 %v9220_v46 }
 0x656   :  { %8577 = vmatprep.subr.bf16.mxu0 %v9040_v3  ;;  %8607 = vmatprep.subr.bf16.mxu1 %v9040_v3 }
 0x659   :  { %8579 = vmatpush3.bf16.msra.mxu0 %v9314_v24  ;;  %8609 = vmatpush3.bf16.msra.mxu1 %v9233_v57 }
 0x65a   :  { %8580 = vmatprep.subr.bf16.mxu0 %v9040_v3  ;;  %8610 = vmatprep.subr.bf16.mxu1 %v9040_v3 }
 0x65d   :  { %8582 = vmatpush3.bf16.msra.mxu0 %v9322_v30  ;;  %8612 = vmatpush3.bf16.msra.mxu1 %v9252_v14 }
 0x65e   :  { %8583 = vmatprep.subr.bf16.mxu0 %v9040_v3  ;;  %8637 = vmatprep.subr.bf16.mxu1 %v9040_v3 }
 0x660   :  { %7305 = vmatmul.mubr.f32.vlgmr.msra.gmra.mrb[32].mxu1 %v3391_v2 }
 0x661   :  { %8585 = vmatpush3.bf16.msra.mxu0 %v9330_v42  ;;  %8639 = vmatpush3.bf16.msra.mxu1 %v9101_v13 }
 0x662   :  { %8586 = vmatprep.subr.bf16.mxu0 %v9040_v3  ;;  %8640 = vmatprep.subr.bf16.mxu1 %v9040_v3 }
 0x663   :  { %7374 = vmatprep.mubr.msk.f32.mxu1 %vm9041_vm0, %v9042_v12 }
 0x665   :  { %8588 = vmatpush3.bf16.msra.mxu0 %v9338_v8  ;;  %8642 = vmatpush3.bf16.msra.mxu1 %v9110_v20 }
 0x666   :  { %8613 = vmatprep.subr.bf16.mxu0 %v9040_v3  ;;  %8643 = vmatprep.subr.bf16.mxu1 %v9040_v3 }
 0x668   :  { %7270 = vmatmul.mubr.f32.vlgmr.msra.gmra.mrb[32].mxu0 %v3390_v62 }
 0x669   :  { %8615 = vmatpush3.bf16.msra.mxu0 %v9348_v36  ;;  %8645 = vmatpush3.bf16.msra.mxu1 %v9129_v34 }
 0x66a   :  { %8616 = vmatprep.subr.bf16.mxu0 %v9040_v3  ;;  %8646 = vmatprep.subr.bf16.mxu1 %v9040_v3 }
 0x66b   :  { %7339 = vmatprep.mubr.msk.f32.mxu0 %vm9041_vm0, %v9042_v12 }
 0x66d   :  { %8618 = vmatpush3.bf16.msra.mxu0 %v9359_v50  ;;  %8648 = vmatpush3.bf16.msra.mxu1 %v9155_v53 }
 0x66e   :  { %8619 = vmatprep.subr.bf16.mxu0 %v9040_v3  ;;  %8649 = vmatprep.subr.bf16.mxu1 %v9040_v3 }
 0x671   :  { %8621 = vmatpush3.bf16.msra.mxu0 %v9371_v15  ;;  %8651 = vmatpush3.bf16.msra.mxu1 %v9178_v5 }
 0x672   :  { %8622 = vmatprep.subr.bf16.mxu0 %v9040_v3  ;;  %8652 = vmatprep.subr.bf16.mxu1 %v9040_v3 }
 0x675   :  { %8624 = vmatpush3.bf16.msra.mxu0 %v9383_v16  ;;  %8654 = vmatpush3.bf16.msra.mxu1 %v9220_v46 }
 0x676   :  { %8625 = vmatprep.subr.bf16.mxu0 %v9040_v3  ;;  %8655 = vmatprep.subr.bf16.mxu1 %v9040_v3 }
 0x679   :  { %8627 = vmatpush3.bf16.msra.mxu0 %v9395_v19  ;;  %8657 = vmatpush3.bf16.msra.mxu1 %v9233_v57 }
 0x67a   :  { %8628 = vmatprep.subr.bf16.mxu0 %v9040_v3  ;;  %8658 = vmatprep.subr.bf16.mxu1 %v9040_v3 }
 0x67d   :  { %8630 = vmatpush3.bf16.msra.mxu0 %v9405_v21  ;;  %8660 = vmatpush3.bf16.msra.mxu1 %v9252_v14 }
 0x67e   :  { %8631 = vmatprep.subr.bf16.mxu0 %v9040_v3  ;;  %8685 = vmatprep.subr.bf16.mxu1 %v9040_v3 }
 0x680   :  { %7375 = vmatmul.mubr.f32.vlgmr.msra.gmra.mrb[34].mxu1 %v9946_v51 }
 0x681   :  { %8633 = vmatpush3.bf16.msra.mxu0 %v9415_v22  ;;  %8687 = vmatpush3.bf16.msra.mxu1 %v9148_v48 }
 0x682   :  { %8634 = vmatprep.subr.bf16.mxu0 %v9040_v3  ;;  %8688 = vmatprep.subr.bf16.mxu1 %v9040_v3 }
 0x683   :  { %7444 = vmatprep.mubr.msk.f32.mxu1 %vm9041_vm0, %v9042_v12 }
 0x685   :  { %8636 = vmatpush3.bf16.msra.mxu0 %v9425_v23  ;;  %8690 = vmatpush3.bf16.msra.mxu1 %v9163_v59 }
 0x686   :  { %8661 = vmatprep.subr.bf16.mxu0 %v9040_v3  ;;  %8691 = vmatprep.subr.bf16.mxu1 %v9040_v3 }
 0x688   :  { %7340 = vmatmul.mubr.f32.vlgmr.msra.gmra.mrb[34].mxu0 %v9946_v51 }
 0x689   :  { %8663 = vmatpush3.bf16.msra.mxu0 %v9101_v13  ;;  %8693 = vmatpush3.bf16.msra.mxu1 %v9184_v9 }
 0x68a   :  { %8664 = vmatprep.subr.bf16.mxu0 %v9040_v3  ;;  %8694 = vmatprep.subr.bf16.mxu1 %v9040_v3 }
 0x68b   :  { %7409 = vmatprep.mubr.msk.f32.mxu0 %vm9041_vm0, %v9042_v12 }
 0x68d   :  { %8666 = vmatpush3.bf16.msra.mxu0 %v9110_v20  ;;  %8696 = vmatpush3.bf16.msra.mxu1 %v9222_v49 }
 0x68e   :  { %8667 = vmatprep.subr.bf16.mxu0 %v9040_v3  ;;  %8697 = vmatprep.subr.bf16.mxu1 %v9040_v3 }
 0x691   :  { %8669 = vmatpush3.bf16.msra.mxu0 %v9129_v34  ;;  %8699 = vmatpush3.bf16.msra.mxu1 %v9237_v55 }
 0x692   :  { %8670 = vmatprep.subr.bf16.mxu0 %v9040_v3  ;;  %8700 = vmatprep.subr.bf16.mxu1 %v9040_v3 }
 0x695   :  { %8672 = vmatpush3.bf16.msra.mxu0 %v9155_v53  ;;  %8702 = vmatpush3.bf16.msra.mxu1 %v9259_v29 }
 0x696   :  { %8673 = vmatprep.subr.bf16.mxu0 %v9040_v3  ;;  %8703 = vmatprep.subr.bf16.mxu1 %v9040_v3 }
 0x699   :  { %8675 = vmatpush3.bf16.msra.mxu0 %v9178_v5  ;;  %8705 = vmatpush3.bf16.msra.mxu1 %v9271_v43 }
 0x69a   :  { %8676 = vmatprep.subr.bf16.mxu0 %v9040_v3  ;;  %8706 = vmatprep.subr.bf16.mxu1 %v9040_v3 }
 0x69d   :  { %8678 = vmatpush3.bf16.msra.mxu0 %v9220_v46  ;;  %8708 = vmatpush3.bf16.msra.mxu1 %v9281_v4 }
 0x69e   :  { %8679 = vmatprep.subr.bf16.mxu0 %v9040_v3  ;;  %8733 = vmatprep.subr.bf16.mxu1 %v9040_v3 }
 0x6a1   :  { %8681 = vmatpush3.bf16.msra.mxu0 %v9233_v57 }
 0x6a2   :  { %8682 = vmatprep.subr.bf16.mxu0 %v9040_v3 }
 0x6a5   :  { %8684 = vmatpush3.bf16.msra.mxu0 %v9252_v14 }
 0x6a6   :  { %8709 = vmatprep.subr.bf16.mxu0 %v9040_v3 }
 0x713   :  { %v3546_v11 = vpop.f32.mrb[30].mxu1 }
 0x714   :  { %v7236_v26 = vpop.f32.mrb[31].mxu1 }
 0x71b   :  { %v3395_v17 = vpop.f32.mrb[30].mxu0 }
 0x71c   :  { %v3547_v32 = vadd.f32 %v3546_v11, %v3395_v17  ;;  %v7201_v35 = vpop.f32.mrb[31].mxu0 }
 0x733   :  { %v3739_v38 = vpop.f32.mrb[32].mxu1 }
 0x734   :  { %v7306_v39 = vpop.f32.mrb[33].mxu1 }
 0x73b   :  { %v3650_v40 = vpop.f32.mrb[32].mxu0 }
 0x73c   :  { %v3651_v45 = vadd.f32 %v3650_v40, %v3547_v32  ;;  %v7271_v52 = vpop.f32.mrb[33].mxu0 }
 0x73e   :  { %v3740_v54 = vadd.f32 %v3739_v38, %v3651_v45  ;;  %v3953_v38 = vld [vmem:[%s3952_s30] sm:$0x1] }
 0x753   :  { %v3945_v60 = vpop.f32.mrb[34].mxu1 }
 0x754   :  { %v7376_v63 = vpop.f32.mrb[35].mxu1 }
 0x75b   :  { %v3858_v0 = vpop.f32.mrb[34].mxu0 }
 0x75c   :  { %v3859_v7 = vadd.f32 %v3858_v0, %v3740_v54  ;;  %v7341_v61 = vpop.f32.mrb[35].mxu0 }
 0x75e   :  { %v3946_v28 = vadd.f32 %v3945_v60, %v3859_v7 }
 0x760   :  { %v3949_v31 = vadd.f32 %v3946_v28, %v3307_v27 }
 0x762   :  { %8967 = vtanh.f32 %v3949_v31 }
 0x76c   :  { %v8968_v33 = vpop.eup %8967 }
 0x76d   :  { %v10063_v37 = vand.u32 4294901760, %v8968_v33  ;;  %v5256_v41 = vrot.slane %v8968_v33, 3 }
 0x76f   :  { %7445 = vmatmul.mubr.f32.vlgmr.msra.gmra.mrb[36].mxu1 %v10063_v37  ;;  %v4036_v47 = vsub.f32 %v8968_v33, %v10063_v37  ;;  %v10068_v51 = vsel %vm5272_vm5, %v9951_v1, %v5256_v41 }
 0x770   :  { %8735 = vmatpush3.bf16.msra.mxu1 %v9101_v13  ;;  %7514 = vmatprep.mubr.msk.f32.mxu1 %vm9041_vm0, %v9042_v12 }
 0x771   :  { %8736 = vmatprep.subr.bf16.mxu1 %v9040_v3  ;;  %v4037_v56 = vand.u32 4294901760, %v4036_v47 }
 0x773   :  { %v4038_v62 = vsub.f32 %v4036_v47, %v4037_v56 }
 0x774   :  { %8738 = vmatpush3.bf16.msra.mxu1 %v9110_v20 }
 0x775   :  { %8739 = vmatprep.subr.bf16.mxu1 %v9040_v3  ;;  %v4039_v2 = vand.u32 4294901760, %v4038_v62 }
 0x777   :  { %7410 = vmatmul.mubr.f32.vlgmr.msra.gmra.mrb[36].mxu0 %v4039_v2 }
 0x778   :  { %8711 = vmatpush3.bf16.msra.mxu0 %v9275_v44  ;;  %8741 = vmatpush3.bf16.msra.mxu1 %v9129_v34 }
 0x779   :  { %8712 = vmatprep.subr.bf16.mxu0 %v9040_v3  ;;  %8742 = vmatprep.subr.bf16.mxu1 %v9040_v3 }
 0x77a   :  { %7479 = vmatprep.mubr.msk.f32.mxu0 %vm9041_vm0, %v9042_v12 }
 0x77c   :  { %8714 = vmatpush3.bf16.msra.mxu0 %v9285_v6  ;;  %8744 = vmatpush3.bf16.msra.mxu1 %v9155_v53 }
 0x77d   :  { %8715 = vmatprep.subr.bf16.mxu0 %v9040_v3  ;;  %8745 = vmatprep.subr.bf16.mxu1 %v9040_v3 }
 0x780   :  { %8717 = vmatpush3.bf16.msra.mxu0 %v9295_v58  ;;  %8747 = vmatpush3.bf16.msra.mxu1 %v9178_v5 }
 0x781   :  { %8718 = vmatprep.subr.bf16.mxu0 %v9040_v3  ;;  %8748 = vmatprep.subr.bf16.mxu1 %v9040_v3 }
 0x784   :  { %8720 = vmatpush3.bf16.msra.mxu0 %v9304_v18  ;;  %8750 = vmatpush3.bf16.msra.mxu1 %v9220_v46 }
 0x785   :  { %8721 = vmatprep.subr.bf16.mxu0 %v9040_v3  ;;  %8751 = vmatprep.subr.bf16.mxu1 %v9040_v3 }
 0x788   :  { %8723 = vmatpush3.bf16.msra.mxu0 %v9314_v24  ;;  %8753 = vmatpush3.bf16.msra.mxu1 %v9233_v57 }
 0x789   :  { %8724 = vmatprep.subr.bf16.mxu0 %v9040_v3  ;;  %8754 = vmatprep.subr.bf16.mxu1 %v9040_v3 }
 0x78c   :  { %8726 = vmatpush3.bf16.msra.mxu0 %v9322_v30  ;;  %8756 = vmatpush3.bf16.msra.mxu1 %v9252_v14 }
 0x78d   :  { %8727 = vmatprep.subr.bf16.mxu0 %v9040_v3  ;;  %8781 = vmatprep.subr.bf16.mxu1 %v9040_v3 }
 0x78f   :  { %7515 = vmatmul.mubr.f32.vlgmr.msra.gmra.mrb[38].mxu1 %v4037_v56 }
 0x790   :  { %8729 = vmatpush3.bf16.msra.mxu0 %v9330_v42  ;;  %8783 = vmatpush3.bf16.msra.mxu1 %v9101_v13 }
 0x791   :  { %8730 = vmatprep.subr.bf16.mxu0 %v9040_v3  ;;  %8784 = vmatprep.subr.bf16.mxu1 %v9040_v3 }
 0x792   :  { %7584 = vmatprep.mubr.msk.f32.mxu1 %vm9041_vm0, %v9042_v12 }
 0x794   :  { %8732 = vmatpush3.bf16.msra.mxu0 %v9338_v8  ;;  %8786 = vmatpush3.bf16.msra.mxu1 %v9110_v20 }
 0x795   :  { %8757 = vmatprep.subr.bf16.mxu0 %v9040_v3  ;;  %8787 = vmatprep.subr.bf16.mxu1 %v9040_v3 }
 0x797   :  { %7480 = vmatmul.mubr.f32.vlgmr.msra.gmra.mrb[38].mxu0 %v4036_v47 }
 0x798   :  { %8759 = vmatpush3.bf16.msra.mxu0 %v9348_v36  ;;  %8789 = vmatpush3.bf16.msra.mxu1 %v9129_v34 }
 0x799   :  { %8760 = vmatprep.subr.bf16.mxu0 %v9040_v3  ;;  %8790 = vmatprep.subr.bf16.mxu1 %v9040_v3 }
 0x79a   :  { %7549 = vmatprep.mubr.msk.f32.mxu0 %vm9041_vm0, %v9042_v12 }
 0x79c   :  { %8762 = vmatpush3.bf16.msra.mxu0 %v9359_v50  ;;  %8792 = vmatpush3.bf16.msra.mxu1 %v9155_v53 }
 0x79d   :  { %8763 = vmatprep.subr.bf16.mxu0 %v9040_v3  ;;  %8793 = vmatprep.subr.bf16.mxu1 %v9040_v3 }
 0x7a0   :  { %8765 = vmatpush3.bf16.msra.mxu0 %v9371_v15  ;;  %8795 = vmatpush3.bf16.msra.mxu1 %v9178_v5 }
 0x7a1   :  { %8766 = vmatprep.subr.bf16.mxu0 %v9040_v3  ;;  %8796 = vmatprep.subr.bf16.mxu1 %v9040_v3 }
 0x7a4   :  { %8768 = vmatpush3.bf16.msra.mxu0 %v9383_v16  ;;  %8798 = vmatpush3.bf16.msra.mxu1 %v9220_v46 }
 0x7a5   :  { %8769 = vmatprep.subr.bf16.mxu0 %v9040_v3  ;;  %8799 = vmatprep.subr.bf16.mxu1 %v9040_v3 }
 0x7a8   :  { %8771 = vmatpush3.bf16.msra.mxu0 %v9395_v19  ;;  %8801 = vmatpush3.bf16.msra.mxu1 %v9233_v57 }
 0x7a9   :  { %8772 = vmatprep.subr.bf16.mxu0 %v9040_v3  ;;  %8802 = vmatprep.subr.bf16.mxu1 %v9040_v3 }
 0x7ac   :  { %8774 = vmatpush3.bf16.msra.mxu0 %v9405_v21  ;;  %8804 = vmatpush3.bf16.msra.mxu1 %v9252_v14 }
 0x7ad   :  { %8775 = vmatprep.subr.bf16.mxu0 %v9040_v3  ;;  %8829 = vmatprep.subr.bf16.mxu1 %v9040_v3 }
 0x7af   :  { %7585 = vmatmul.mubr.f32.vlgmr.msra.gmra.mrb[40].mxu1 %v10063_v37 }
 0x7b0   :  { %8777 = vmatpush3.bf16.msra.mxu0 %v9415_v22  ;;  %8831 = vmatpush3.bf16.msra.mxu1 %v9148_v48 }
 0x7b1   :  { %8778 = vmatprep.subr.bf16.mxu0 %v9040_v3  ;;  %8832 = vmatprep.subr.bf16.mxu1 %v9040_v3 }
 0x7b2   :  { %7654 = vmatprep.mubr.msk.f32.mxu1 %vm9041_vm0, %v9042_v12 }
 0x7b4   :  { %8780 = vmatpush3.bf16.msra.mxu0 %v9425_v23  ;;  %8834 = vmatpush3.bf16.msra.mxu1 %v9163_v59 }
 0x7b5   :  { %8805 = vmatprep.subr.bf16.mxu0 %v9040_v3  ;;  %8835 = vmatprep.subr.bf16.mxu1 %v9040_v3 }
 0x7b7   :  { %7550 = vmatmul.mubr.f32.vlgmr.msra.gmra.mrb[40].mxu0 %v10063_v37 }
 0x7b8   :  { %8807 = vmatpush3.bf16.msra.mxu0 %v9101_v13  ;;  %8837 = vmatpush3.bf16.msra.mxu1 %v9184_v9 }
 0x7b9   :  { %8808 = vmatprep.subr.bf16.mxu0 %v9040_v3  ;;  %8838 = vmatprep.subr.bf16.mxu1 %v9040_v3 }
 0x7ba   :  { %7619 = vmatprep.mubr.msk.f32.mxu0 %vm9041_vm0, %v9042_v12 }
 0x7bc   :  { %8810 = vmatpush3.bf16.msra.mxu0 %v9110_v20  ;;  %8840 = vmatpush3.bf16.msra.mxu1 %v9222_v49 }
 0x7bd   :  { %8811 = vmatprep.subr.bf16.mxu0 %v9040_v3  ;;  %8841 = vmatprep.subr.bf16.mxu1 %v9040_v3 }
 0x7c0   :  { %8813 = vmatpush3.bf16.msra.mxu0 %v9129_v34  ;;  %8843 = vmatpush3.bf16.msra.mxu1 %v9237_v55 }
 0x7c1   :  { %8814 = vmatprep.subr.bf16.mxu0 %v9040_v3  ;;  %8844 = vmatprep.subr.bf16.mxu1 %v9040_v3 }
 0x7c4   :  { %8816 = vmatpush3.bf16.msra.mxu0 %v9155_v53  ;;  %8846 = vmatpush3.bf16.msra.mxu1 %v9259_v29 }
 0x7c5   :  { %8817 = vmatprep.subr.bf16.mxu0 %v9040_v3  ;;  %8847 = vmatprep.subr.bf16.mxu1 %v9040_v3 }
 0x7c8   :  { %8819 = vmatpush3.bf16.msra.mxu0 %v9178_v5  ;;  %8849 = vmatpush3.bf16.msra.mxu1 %v9271_v43 }
 0x7c9   :  { %8820 = vmatprep.subr.bf16.mxu0 %v9040_v3  ;;  %8850 = vmatprep.subr.bf16.mxu1 %v9040_v3 }
 0x7cc   :  { %8822 = vmatpush3.bf16.msra.mxu0 %v9220_v46  ;;  %8852 = vmatpush3.bf16.msra.mxu1 %v9281_v4 }
 0x7cd   :  { %8823 = vmatprep.subr.bf16.mxu0 %v9040_v3  ;;  %8877 = vmatprep.subr.bf16.mxu1 %v9040_v3 }
 0x7d0   :  { %8825 = vmatpush3.bf16.msra.mxu0 %v9233_v57 }
 0x7d1   :  { %8826 = vmatprep.subr.bf16.mxu0 %v9040_v3 }
 0x7d4   :  { %8828 = vmatpush3.bf16.msra.mxu0 %v9252_v14 }
 0x7d5   :  { %8853 = vmatprep.subr.bf16.mxu0 %v9040_v3 }
 0x842   :  { %v4192_v48 = vpop.f32.mrb[36].mxu1 }
 0x843   :  { %v7446_v59 = vpop.f32.mrb[37].mxu1 }
 0x84a   :  { %v4041_v9 = vpop.f32.mrb[36].mxu0 }
 0x84b   :  { %v4193_v49 = vadd.f32 %v4192_v48, %v4041_v9  ;;  %v7411_v55 = vpop.f32.mrb[37].mxu0 }
 0x862   :  { %v4385_v29 = vpop.f32.mrb[38].mxu1 }
 0x863   :  { %v7516_v43 = vpop.f32.mrb[39].mxu1 }
 0x86a   :  { %v4296_v4 = vpop.f32.mrb[38].mxu0 }
 0x86b   :  { %v4297_v1 = vadd.f32 %v4296_v4, %v4193_v49  ;;  %v7481_v10 = vpop.f32.mrb[39].mxu0 }
 0x86d   :  { %v4386_v25 = vadd.f32 %v4385_v29, %v4297_v1 }
 0x882   :  { %v4591_v11 = vpop.f32.mrb[40].mxu1 }
 0x883   :  { %v7586_v26 = vpop.f32.mrb[41].mxu1 }
 0x88a   :  { %v4504_v17 = vpop.f32.mrb[40].mxu0 }
 0x88b   :  { %v4505_v32 = vadd.f32 %v4504_v17, %v4386_v25  ;;  %v7551_v35 = vpop.f32.mrb[41].mxu0 }
 0x88d   :  { %v4592_v39 = vadd.f32 %v4591_v11, %v4505_v32 }
 0x88f   :  { %v4595_v40 = vadd.f32 %v4592_v39, %v3953_v38 }
 0x891   :  { %8969 = vtanh.f32 %v4595_v40 }
 0x89b   :  { %v8970_v45 = vpop.eup %8969 }
 0x89c   :  { %v10180_v52 = vand.u32 4294901760, %v8970_v45  ;;  %v5259_v54 = vrot.slane %v8970_v45, 2 }
 0x89e   :  { %7655 = vmatmul.mubr.f32.vlgmr.msra.gmra.mrb[42].mxu1 %v10180_v52  ;;  %v4682_v60 = vsub.f32 %v8970_v45, %v10180_v52  ;;  %v10185_v63 = vsel %vm5274_vm6, %v10068_v51, %v5259_v54 }
 0x89f   :  { %8879 = vmatpush3.bf16.msra.mxu1 %v9101_v13  ;;  %7724 = vmatprep.mubr.msk.f32.mxu1 %vm9041_vm0, %v9042_v12 }
 0x8a0   :  { %8880 = vmatprep.subr.bf16.mxu1 %v9040_v3  ;;  %v4683_v0 = vand.u32 4294901760, %v4682_v60 }
 0x8a2   :  { %v4684_v7 = vsub.f32 %v4682_v60, %v4683_v0 }
 0x8a3   :  { %8882 = vmatpush3.bf16.msra.mxu1 %v9110_v20 }
 0x8a4   :  { %8883 = vmatprep.subr.bf16.mxu1 %v9040_v3  ;;  %v4685_v61 = vand.u32 4294901760, %v4684_v7 }
 0x8a6   :  { %7620 = vmatmul.mubr.f32.vlgmr.msra.gmra.mrb[42].mxu0 %v4685_v61 }
 0x8a7   :  { %8855 = vmatpush3.bf16.msra.mxu0 %v9275_v44  ;;  %8885 = vmatpush3.bf16.msra.mxu1 %v9129_v34 }
 0x8a8   :  { %8856 = vmatprep.subr.bf16.mxu0 %v9040_v3  ;;  %8886 = vmatprep.subr.bf16.mxu1 %v9040_v3 }
 0x8a9   :  { %7689 = vmatprep.mubr.msk.f32.mxu0 %vm9041_vm0, %v9042_v12 }
 0x8ab   :  { %8858 = vmatpush3.bf16.msra.mxu0 %v9285_v6  ;;  %8888 = vmatpush3.bf16.msra.mxu1 %v9155_v53 }
 0x8ac   :  { %8859 = vmatprep.subr.bf16.mxu0 %v9040_v3  ;;  %8889 = vmatprep.subr.bf16.mxu1 %v9040_v3 }
 0x8af   :  { %8861 = vmatpush3.bf16.msra.mxu0 %v9295_v58  ;;  %8891 = vmatpush3.bf16.msra.mxu1 %v9178_v5 }
 0x8b0   :  { %8862 = vmatprep.subr.bf16.mxu0 %v9040_v3  ;;  %8892 = vmatprep.subr.bf16.mxu1 %v9040_v3 }
 0x8b3   :  { %8864 = vmatpush3.bf16.msra.mxu0 %v9304_v18  ;;  %8894 = vmatpush3.bf16.msra.mxu1 %v9220_v46 }
 0x8b4   :  { %8865 = vmatprep.subr.bf16.mxu0 %v9040_v3  ;;  %8895 = vmatprep.subr.bf16.mxu1 %v9040_v3 }
 0x8b7   :  { %8867 = vmatpush3.bf16.msra.mxu0 %v9314_v24  ;;  %8897 = vmatpush3.bf16.msra.mxu1 %v9233_v57 }
 0x8b8   :  { %8868 = vmatprep.subr.bf16.mxu0 %v9040_v3  ;;  %8898 = vmatprep.subr.bf16.mxu1 %v9040_v3 }
 0x8bb   :  { %8870 = vmatpush3.bf16.msra.mxu0 %v9322_v30  ;;  %8900 = vmatpush3.bf16.msra.mxu1 %v9252_v14 }
 0x8bc   :  { %8871 = vmatprep.subr.bf16.mxu0 %v9040_v3  ;;  %8925 = vmatprep.subr.bf16.mxu1 %v9040_v3 }
 0x8be   :  { %7725 = vmatmul.mubr.f32.vlgmr.msra.gmra.mrb[44].mxu1 %v4683_v0 }
 0x8bf   :  { %8873 = vmatpush3.bf16.msra.mxu0 %v9330_v42  ;;  %8927 = vmatpush3.bf16.msra.mxu1 %v9101_v13  ;;  %v4599_v42 = vld [vmem:[%s4598_s6] sm:$0x1] }
 0x8c0   :  { %8874 = vmatprep.subr.bf16.mxu0 %v9040_v3  ;;  %8928 = vmatprep.subr.bf16.mxu1 %v9040_v3 }
 0x8c1   :  { %7794 = vmatprep.mubr.msk.f32.mxu1 %vm9041_vm0, %v9042_v12 }
 0x8c3   :  { %8876 = vmatpush3.bf16.msra.mxu0 %v9338_v8  ;;  %8930 = vmatpush3.bf16.msra.mxu1 %v9110_v20 }
 0x8c4   :  { %8901 = vmatprep.subr.bf16.mxu0 %v9040_v3  ;;  %8931 = vmatprep.subr.bf16.mxu1 %v9040_v3 }
 0x8c6   :  { %7690 = vmatmul.mubr.f32.vlgmr.msra.gmra.mrb[44].mxu0 %v4682_v60 }
 0x8c7   :  { %8903 = vmatpush3.bf16.msra.mxu0 %v9348_v36  ;;  %8933 = vmatpush3.bf16.msra.mxu1 %v9129_v34 }
 0x8c8   :  { %8904 = vmatprep.subr.bf16.mxu0 %v9040_v3  ;;  %8934 = vmatprep.subr.bf16.mxu1 %v9040_v3 }
 0x8c9   :  { %7759 = vmatprep.mubr.msk.f32.mxu0 %vm9041_vm0, %v9042_v12 }
 0x8cb   :  { %8906 = vmatpush3.bf16.msra.mxu0 %v9359_v50  ;;  %8936 = vmatpush3.bf16.msra.mxu1 %v9155_v53 }
 0x8cc   :  { %8907 = vmatprep.subr.bf16.mxu0 %v9040_v3  ;;  %8937 = vmatprep.subr.bf16.mxu1 %v9040_v3 }
 0x8cf   :  { %8909 = vmatpush3.bf16.msra.mxu0 %v9371_v15  ;;  %8939 = vmatpush3.bf16.msra.mxu1 %v9178_v5 }
 0x8d0   :  { %8910 = vmatprep.subr.bf16.mxu0 %v9040_v3  ;;  %8940 = vmatprep.subr.bf16.mxu1 %v9040_v3 }
 0x8d3   :  { %8912 = vmatpush3.bf16.msra.mxu0 %v9383_v16  ;;  %8942 = vmatpush3.bf16.msra.mxu1 %v9220_v46 }
 0x8d4   :  { %8913 = vmatprep.subr.bf16.mxu0 %v9040_v3  ;;  %8943 = vmatprep.subr.bf16.mxu1 %v9040_v3 }
 0x8d7   :  { %8915 = vmatpush3.bf16.msra.mxu0 %v9395_v19  ;;  %8945 = vmatpush3.bf16.msra.mxu1 %v9233_v57 }
 0x8d8   :  { %8916 = vmatprep.subr.bf16.mxu0 %v9040_v3  ;;  %8946 = vmatprep.subr.bf16.mxu1 %v9040_v3 }
 0x8db   :  { %8918 = vmatpush3.bf16.msra.mxu0 %v9405_v21  ;;  %8948 = vmatpush3.bf16.msra.mxu1 %v9252_v14 }
 0x8dc   :  { %8919 = vmatprep.subr.bf16.mxu0 %v9040_v3 }
 0x8de   :  { %7795 = vmatmul.mubr.f32.vlgmr.msra.gmra.mrb[46].mxu1 %v10180_v52 }
 0x8df   :  { %8921 = vmatpush3.bf16.msra.mxu0 %v9415_v22 }
 0x8e0   :  { %8922 = vmatprep.subr.bf16.mxu0 %v9040_v3 }
 0x8e3   :  { %8924 = vmatpush3.bf16.msra.mxu0 %v9425_v23 }
 0x8e6   :  { %7760 = vmatmul.mubr.f32.vlgmr.msra.gmra.mrb[46].mxu0 %v10180_v52 }
 0x971   :  { %v4838_v12 = vpop.f32.mrb[42].mxu1 }
 0x972   :  { %v7656_v13 = vpop.f32.mrb[43].mxu1 }
 0x979   :  { %v4687_v20 = vpop.f32.mrb[42].mxu0 }
 0x97a   :  { %v4839_v34 = vadd.f32 %v4838_v12, %v4687_v20  ;;  %v7621_v53 = vpop.f32.mrb[43].mxu0 }
 0x991   :  { %v5031_v5 = vpop.f32.mrb[44].mxu1 }
 0x992   :  { %v7726_v46 = vpop.f32.mrb[45].mxu1 }
 0x999   :  { %v4942_v57 = vpop.f32.mrb[44].mxu0 }
 0x99a   :  { %v4943_v14 = vadd.f32 %v4942_v57, %v4839_v34  ;;  %v7691_v44 = vpop.f32.mrb[45].mxu0 }
 0x99c   :  { %v5032_v6 = vadd.f32 %v5031_v5, %v4943_v14 }
 0x9b1   :  { %v5237_v58 = vpop.f32.mrb[46].mxu1 }
 0x9b2   :  { %v7796_v18 = vpop.f32.mrb[47].mxu1 }
 0x9b9   :  { %v5150_v24 = vpop.f32.mrb[46].mxu0 }
 0x9ba   :  { %v5151_v3 = vadd.f32 %v5150_v24, %v5032_v6  ;;  %v7761_v30 = vpop.f32.mrb[47].mxu0 }
 0x9bc   :  { %v5238_v8 = vadd.f32 %v5237_v58, %v5151_v3 }
 0x9be   :  { %v5241_v36 = vadd.f32 %v5238_v8, %v4599_v42 }
 0x9c0   :  { %8971 = vtanh.f32 %v5241_v36 }
 0x9ca   :  { %v8972_v50 = vpop.eup %8971 }
 0x9cb   :  { %v5262_v15 = vrot.slane %v8972_v50, 1 }
 0x9cd   :  { %v5277_v16 = vsel %vm5276_vm7, %v10185_v63, %v5262_v15 }
 0x9ce   :  { %5278 = vst [vmem:[%s10267_s4] sm:$0xff] %v5277_v16 }
 0x9cf   :  { %5283 = vsyncpa [#allocation3], 1 }
 0x9d0   :  { %5284 = vsyncpa [#allocation7], 1 }
 0x9d1   :  { %5285 = vsyncpa [#allocation4], 1 }

</bundles_post_ra>
